<compile_context>
chip_gen: v7x
topology: tpu7x:2x2x1
jax: 0.10.0
libtpu: 0.0.40
codegen_flags: <defaults>
</compile_context>

<pallas_src>
import math
import functools

import jax
import jax.numpy as jnp
from jax.experimental import pallas as pl
from jax.experimental.pallas import tpu as pltpu


# ---- packed per-layer parameter layout --------------------------------------
# 8 stacked ExE attention projection matrices:
SA_WQ, SA_WK, SA_WV, SA_WO = 0, 1, 2, 3
CA_WQ, CA_WK, CA_WV, CA_WO = 4, 5, 6, 7
# 16 stacked E-wide vectors (last row is zero padding):
SA_BQ, SA_BK, SA_BV, SA_BO = 0, 1, 2, 3
CA_BQ, CA_BK, CA_BV, CA_BO = 4, 5, 6, 7
FF_B2 = 8
LN1_G, LN1_B, LN2_G, LN2_B, LN3_G, LN3_B = 9, 10, 11, 12, 13, 14
NUM_VEC = 16


def _round_up(n, m):
    return ((n + m - 1) // m) * m


# ---------------------------------------------------------------------------
# Fused decoder-stack + vocab-projection kernel
# ---------------------------------------------------------------------------
def decoder_stack_kernel(x_ref, mem_ref, attn_w_ref, vec_ref,
                         ff_w1_ref, ff_b1_ref, ff_w2_ref,
                         fc_w_ref, fc_b_ref,
                         out_ref, h_ref, *, num_heads):
    """grid = (batch, layer).  Activation [T, E] carried in h_ref per batch."""
    layer = pl.program_id(1)
    n_layers = pl.num_programs(1)

    T, E = h_ref.shape
    dh = E // num_heads
    scale = 1.0 / math.sqrt(dh)

    # Load the embedded input for this batch element at the first layer.
    @pl.when(layer == 0)
    def _():
        h_ref[...] = x_ref[0]

    x2 = h_ref[...]          # [T, E]  carried activation (VMEM resident)
    mem2 = mem_ref[0]        # [S, E]
    vec = vec_ref[0]         # [16, E] packed biases / LN params

    def layer_norm(v, g, b):
        mu = jnp.mean(v, axis=-1, keepdims=True)
        var = jnp.mean((v - mu) ** 2, axis=-1, keepdims=True)
        return (v - mu) * jax.lax.rsqrt(var + 1e-5) * g + b

    def mha(q_in, kv_in, wq, wk, wv, bq, bk, bv, wo, bo):
        Tq = q_in.shape[0]
        Tk = kv_in.shape[0]
        # Full-width projections (K = E contractions on the MXU).
        q = jnp.dot(q_in, wq, preferred_element_type=jnp.float32) + bq
        k = jnp.dot(kv_in, wk, preferred_element_type=jnp.float32) + bk
        v = jnp.dot(kv_in, wv, preferred_element_type=jnp.float32) + bv
        # Merge heads into one batched einsum (no per-head lane slicing loop).
        qh = q.reshape(Tq, num_heads, dh) * scale
        kh = k.reshape(Tk, num_heads, dh)
        vh = v.reshape(Tk, num_heads, dh)
        s = jnp.einsum('qhd,khd->hqk', qh, kh,
                       preferred_element_type=jnp.float32)   # [H, Tq, Tk]
        s = s - jnp.max(s, axis=-1, keepdims=True)
        p = jnp.exp(s)
        # EUP reciprocal instead of a VALU divide.
        p = p * pl.reciprocal(jnp.sum(p, axis=-1, keepdims=True), approx=True)
        ctx = jnp.einsum('hqk,khd->qhd', p, vh,
                         preferred_element_type=jnp.float32)  # [Tq, H, dh]
        # Single output projection with K = E (replaces H K=dh matmuls).
        return (jnp.dot(ctx.reshape(Tq, E), wo,
                        preferred_element_type=jnp.float32) + bo)

    # --- self attention + residual + LN ---
    sa = mha(x2, x2,
             attn_w_ref[0, SA_WQ], attn_w_ref[0, SA_WK], attn_w_ref[0, SA_WV],
             vec[SA_BQ], vec[SA_BK], vec[SA_BV],
             attn_w_ref[0, SA_WO], vec[SA_BO])
    x2 = layer_norm(x2 + sa, vec[LN1_G], vec[LN1_B])

    # --- cross attention + residual + LN ---
    ca = mha(x2, mem2,
             attn_w_ref[0, CA_WQ], attn_w_ref[0, CA_WK], attn_w_ref[0, CA_WV],
             vec[CA_BQ], vec[CA_BK], vec[CA_BV],
             attn_w_ref[0, CA_WO], vec[CA_BO])
    x2 = layer_norm(x2 + ca, vec[LN2_G], vec[LN2_B])

    # --- feed forward (lane-dense padded FF width) + residual + LN ---
    h1 = jnp.maximum(
        jnp.dot(x2, ff_w1_ref[0], preferred_element_type=jnp.float32)
        + ff_b1_ref[0], 0.0)
    ff = jnp.dot(h1, ff_w2_ref[0], preferred_element_type=jnp.float32) \
        + vec[FF_B2]
    x2 = layer_norm(x2 + ff, vec[LN3_G], vec[LN3_B])

    # Carry to the next layer (stays resident in VMEM).
    h_ref[...] = x2

    # Fused, lane-dense vocab projection on the last layer only.
    # NOTE: correct because the layer axis is innermost and "arbitrary"
    # (the output block stays resident until b changes); do not mark it
    # parallel or reorder the grid without revisiting this.
    @pl.when(layer == n_layers - 1)
    def _():
        out_ref[0] = (jnp.dot(x2, fc_w_ref[...],
                              preferred_element_type=jnp.float32)
                      + fc_b_ref[...])


# ---------------------------------------------------------------------------
# pallas_call wrapper
# ---------------------------------------------------------------------------
def pallas_decoder_stack(x, mem, attn_w, vec, ff_w1, ff_b1, ff_w2,
                         fc_w, fc_b, num_heads):
    """x: [B,T,E], mem: [B,S,E] -> padded logits [B,T,Vp]."""
    B, T, E = x.shape
    S = mem.shape[1]
    L = attn_w.shape[0]
    FFp = ff_w1.shape[-1]
    Vp = fc_w.shape[-1]

    in_specs = [
        pl.BlockSpec((1, T, E),        lambda b, l: (b, 0, 0)),     # x
        pl.BlockSpec((1, S, E),        lambda b, l: (b, 0, 0)),     # memory
        pl.BlockSpec((1, 8, E, E),     lambda b, l: (l, 0, 0, 0)),  # attn mats
        pl.BlockSpec((1, NUM_VEC, E),  lambda b, l: (l, 0, 0)),     # vectors
        pl.BlockSpec((1, E, FFp),      lambda b, l: (l, 0, 0)),     # ff_w1
        pl.BlockSpec((1, 1, FFp),      lambda b, l: (l, 0, 0)),     # ff_b1
        pl.BlockSpec((1, FFp, E),      lambda b, l: (l, 0, 0)),     # ff_w2
        pl.BlockSpec((E, Vp),          lambda b, l: (0, 0)),        # fc weight
        pl.BlockSpec((1, Vp),          lambda b, l: (0, 0)),        # fc bias
    ]

    return pl.pallas_call(
        functools.partial(decoder_stack_kernel, num_heads=num_heads),
        out_shape=jax.ShapeDtypeStruct((B, T, Vp), jnp.float32),
        grid=(B, L),
        in_specs=in_specs,
        out_specs=pl.BlockSpec((1, T, Vp), lambda b, l: (b, 0, 0)),
        scratch_shapes=[pltpu.VMEM((T, E), jnp.float32)],
        compiler_params=pltpu.CompilerParams(
            # batch rows are independent (shardable across v7x's 2 TCs);
            # layer axis carries the activation -> sequential.
            dimension_semantics=("parallel", "arbitrary"),
            vmem_limit_bytes=32 * 1024 * 1024),
    )(x, mem, attn_w, vec, ff_w1, ff_b1, ff_w2, fc_w, fc_b)


def _pack_layers(layers, E, FF, FFp):
    """Pack per-layer params into 5 stacked tensors (few DMAs per grid step)."""
    def v(lp, k):
        return lp[k].reshape(E)

    attn_w = jnp.stack([
        jnp.stack([lp["sa_wq"], lp["sa_wk"], lp["sa_wv"], lp["sa_wo"],
                   lp["ca_wq"], lp["ca_wk"], lp["ca_wv"], lp["ca_wo"]], axis=0)
        for lp in layers], axis=0)                                 # [L,8,E,E]
    vec = jnp.stack([
        jnp.stack([v(lp, "sa_bq"), v(lp, "sa_bk"), v(lp, "sa_bv"), v(lp, "sa_bo"),
                   v(lp, "ca_bq"), v(lp, "ca_bk"), v(lp, "ca_bv"), v(lp, "ca_bo"),
                   v(lp, "ff_b2"),
                   v(lp, "ln1_g"), v(lp, "ln1_b"),
                   v(lp, "ln2_g"), v(lp, "ln2_b"),
                   v(lp, "ln3_g"), v(lp, "ln3_b"),
                   jnp.zeros((E,), jnp.float32)], axis=0)
        for lp in layers], axis=0)                                 # [L,16,E]
    ff_w1 = jnp.stack([jnp.pad(lp["ff_w1"], ((0, 0), (0, FFp - FF)))
                       for lp in layers], axis=0)                  # [L,E,FFp]
    ff_b1 = jnp.stack([jnp.pad(lp["ff_b1"], ((0, 0), (0, FFp - FF)))
                       for lp in layers], axis=0)                  # [L,1,FFp]
    ff_w2 = jnp.stack([jnp.pad(lp["ff_w2"], ((0, FFp - FF), (0, 0)))
                       for lp in layers], axis=0)                  # [L,FFp,E]
    return attn_w, vec, ff_w1, ff_b1, ff_w2


def transformer_decoder_forward(tgt, memory, params, num_heads):
    """tgt: [T, B] int32, memory: [S, B, E] -> logits [T, B, V]."""
    E = params["embedding"].shape[1]
    V = params["fc_w"].shape[1]
    FF = params["layers"][0]["ff_w1"].shape[1]
    B = tgt.shape[1]
    FFp = _round_up(FF, 128)
    Vp = _round_up(V, 128)

    emb = params["embedding"][tgt] * math.sqrt(E)          # [T, B, E] (glue)
    # Reproduces the PyTorch quirk: pe is sliced by x.size(1) == batch size.
    x = emb + params["pe"][:, :B]                          # [T, B, E]
    x_bm = jnp.transpose(x, (1, 0, 2))                     # [B, T, E]
    mem_bm = jnp.transpose(memory, (1, 0, 2))              # [B, S, E]

    attn_w, vec, ff_w1, ff_b1, ff_w2 = _pack_layers(params["layers"], E, FF, FFp)
    fc_w = jnp.pad(params["fc_w"], ((0, 0), (0, Vp - V)))  # lane-dense vocab
    fc_b = jnp.pad(params["fc_b"], ((0, 0), (0, Vp - V)))

    logits_bm = pallas_decoder_stack(x_bm, mem_bm, attn_w, vec,
                                     ff_w1, ff_b1, ff_w2, fc_w, fc_b, num_heads)
    return jnp.transpose(logits_bm, (1, 0, 2))[:, :, :V]   # [T, B, V]


# ---------------------------------------------------------------------------
# Deterministic parameter init (synthetic)
# ---------------------------------------------------------------------------
def init_params(key, vocab, E, num_heads, num_layers, FF, max_len):
    keys = iter(jax.random.split(key, 128))

    def nrm(shape, s=0.1):
        return jax.random.normal(next(keys), shape, jnp.float32) * s

    params = {"embedding": nrm((vocab, E), 1.0)}

    pos = jnp.arange(max_len, dtype=jnp.float32)[:, None]
    div = jnp.exp(jnp.arange(0, E, 2, dtype=jnp.float32)
                  * (-math.log(10000.0) / E))
    pe = jnp.zeros((max_len, E), jnp.float32)
    pe = pe.at[:, 0::2].set(jnp.sin(pos * div))
    pe = pe.at[:, 1::2].set(jnp.cos(pos * div))
    params["pe"] = pe[None]                                 # [1, max_len, E]

    layers = []
    for _ in range(num_layers):
        lp = {}
        for nm in ("sa", "ca"):
            lp[nm + "_wq"] = nrm((E, E))
            lp[nm + "_wk"] = nrm((E, E))
            lp[nm + "_wv"] = nrm((E, E))
            lp[nm + "_bq"] = nrm((1, E))
            lp[nm + "_bk"] = nrm((1, E))
            lp[nm + "_bv"] = nrm((1, E))
            lp[nm + "_wo"] = nrm((E, E))
            lp[nm + "_bo"] = nrm((1, E))
        lp["ff_w1"] = nrm((E, FF))
        lp["ff_b1"] = nrm((1, FF))
        lp["ff_w2"] = nrm((FF, E))
        lp["ff_b2"] = nrm((1, E))
        for i in ("1", "2", "3"):
            lp[f"ln{i}_g"] = jnp.ones((1, E), jnp.float32)
            lp[f"ln{i}_b"] = jnp.zeros((1, E), jnp.float32)
        layers.append(lp)
    params["layers"] = layers
    params["fc_w"] = nrm((E, vocab))
    params["fc_b"] = nrm((1, vocab))
    return params


# ---------------------------------------------------------------------------
# Pure-JAX reference (same math) for a sanity check
# ---------------------------------------------------------------------------
def _ref_layer(x, mem, p, num_heads):
    E = x.shape[-1]
    dh = E // num_heads

    def ln(v, g, b):
        mu = v.mean(-1, keepdims=True)
        var = ((v - mu) ** 2).mean(-1, keepdims=True)
        return (v - mu) / jnp.sqrt(var + 1e-5) * g + b

    def mha(q_in, kv_in, pre):
        q = q_in @ p[pre + "_wq"] + p[pre + "_bq"]
        k = kv_in @ p[pre + "_wk"] + p[pre + "_bk"]
        v = kv_in @ p[pre + "_wv"] + p[pre + "_bv"]
        outs = []
        for h in range(num_heads):
            lo, hi = h * dh, (h + 1) * dh
            s = (q[:, lo:hi] / math.sqrt(dh)) @ k[:, lo:hi].T
            a = jax.nn.softmax(s, axis=-1)
            outs.append(a @ v[:, lo:hi])
        return jnp.concatenate(outs, -1) @ p[pre + "_wo"] + p[pre + "_bo"]

    x = ln(x + mha(x, x, "sa"), p["ln1_g"], p["ln1_b"])
    x = ln(x + mha(x, mem, "ca"), p["ln2_g"], p["ln2_b"])
    h = jnp.maximum(x @ p["ff_w1"] + p["ff_b1"], 0.0)
    x = ln(x + h @ p["ff_w2"] + p["ff_b2"], p["ln3_g"], p["ln3_b"])
    return x


def ref_forward(tgt, memory, params, num_heads):
    E = params["embedding"].shape[1]
    emb = params["embedding"][tgt] * math.sqrt(E)
    B = tgt.shape[1]
    x = emb + params["pe"][:, :B]
    x = jnp.transpose(x, (1, 0, 2))
    mem = jnp.transpose(memory, (1, 0, 2))
    for lp in params["layers"]:
        x = jnp.stack([_ref_layer(x[b], mem[b], lp, num_heads)
                       for b in range(x.shape[0])])
    x = jnp.transpose(x, (1, 0, 2))
    return x @ params["fc_w"] + params["fc_b"]


# ---------------------------------------------------------------------------
if __name__ == "__main__":
    vocab_size, embed_size, num_heads, num_layers, ff_hidden = 64, 32, 4, 2, 64
    T, S, B = 8, 8, 2

    key = jax.random.PRNGKey(0)
    kp, kt, km = jax.random.split(key, 3)
    params = init_params(kp, vocab_size, embed_size, num_heads, num_layers,
                         ff_hidden, max_len=32)

    tgt = jax.random.randint(kt, (T, B), 0, vocab_size)          # [T, B]
    memory = jax.random.normal(km, (S, B, embed_size), jnp.float32)

    out = transformer_decoder_forward(tgt, memory, params, num_heads)
    out = jax.block_until_ready(out)

    assert out.shape == (T, B, vocab_size)
    assert bool(jnp.all(jnp.isfinite(out)))

    ref = ref_forward(tgt, memory, params, num_heads)
    max_err = float(jnp.max(jnp.abs(out - ref)))
    assert max_err < 5e-2, f"mismatch vs reference: {max_err}"

    print("KERNEL_OK")
</pallas_src>

<mosaic_0001>
module attributes {stable_mosaic.version = 11 : i64} {
  func.func @decoder_stack_kernel(%arg0: i32, %arg1: i32, %arg2: memref<1x8x32xf32, #tpu.memory_space<vmem>>, %arg3: memref<1x8x32xf32, #tpu.memory_space<vmem>>, %arg4: memref<1x8x32x32xf32, #tpu.memory_space<vmem>>, %arg5: memref<1x16x32xf32, #tpu.memory_space<vmem>>, %arg6: memref<1x32x128xf32, #tpu.memory_space<vmem>>, %arg7: memref<1x1x128xf32, #tpu.memory_space<vmem>>, %arg8: memref<1x128x32xf32, #tpu.memory_space<vmem>>, %arg9: memref<32x128xf32, #tpu.memory_space<vmem>>, %arg10: memref<1x128xf32, #tpu.memory_space<vmem>>, %arg11: memref<1x8x128xf32, #tpu.memory_space<vmem>>, %arg12: memref<8x32xf32, #tpu.memory_space<vmem>>) attributes {dimension_semantics = [#tpu.dimension_semantics<parallel>, #tpu.dimension_semantics<arbitrary>], iteration_bounds = array<i64: 2, 2>, scalar_prefetch = 0 : i64, scratch_operands = 1 : i64, tpu.core_type = #tpu.core_type<tc>, window_params = [{transform_indices = @transform_0, window_bounds = array<i64: 1, 8, 32>}, {transform_indices = @transform_1, window_bounds = array<i64: 1, 8, 32>}, {transform_indices = @transform_2, window_bounds = array<i64: 1, 8, 32, 32>}, {transform_indices = @transform_3, window_bounds = array<i64: 1, 16, 32>}, {transform_indices = @transform_4, window_bounds = array<i64: 1, 32, 128>}, {transform_indices = @transform_5, window_bounds = array<i64: 1, 1, 128>}, {transform_indices = @transform_6, window_bounds = array<i64: 1, 128, 32>}, {pipeline_mode = #tpu.pipeline_mode<synchronous>, transform_indices = @transform_7, window_bounds = array<i64: 32, 128>}, {pipeline_mode = #tpu.pipeline_mode<synchronous>, transform_indices = @transform_8, window_bounds = array<i64: 1, 128>}, {transform_indices = @transform_9, window_bounds = array<i64: 1, 8, 128>}]} {
    %c0_i32 = arith.constant 0 : i32
    %0 = arith.cmpi eq, %arg1, %c0_i32 : i32
    %1 = arith.extui %0 : i1 to i32
    %c0_i32_0 = arith.constant 0 : i32
    %2 = arith.cmpi ne, %1, %c0_i32_0 : i32
    scf.if %2 {
      %c0_80 = arith.constant 0 : index
      %c0_81 = arith.constant 0 : index
      %c0_82 = arith.constant 0 : index
      %218 = vector.load %arg2[%c0_80, %c0_81, %c0_82] : memref<1x8x32xf32, #tpu.memory_space<vmem>>, vector<1x8x32xf32>
      %219 = vector.shape_cast %218 : vector<1x8x32xf32> to vector<8x32xf32>
      %c0_83 = arith.constant 0 : index
      %c0_84 = arith.constant 0 : index
      %220 = vector.load %arg12[%c0_83, %c0_84] : memref<8x32xf32, #tpu.memory_space<vmem>>, vector<8x32xf32>
      tpu.vector_store %arg12[%c0_83, %c0_84], %219 {strides = array<i32>} : memref<8x32xf32, #tpu.memory_space<vmem>>, vector<8x32xf32>,
    } else {
    }
    %c0 = arith.constant 0 : index
    %c0_1 = arith.constant 0 : index
    %3 = vector.load %arg12[%c0, %c0_1] : memref<8x32xf32, #tpu.memory_space<vmem>>, vector<8x32xf32>
    %c0_2 = arith.constant 0 : index
    %c0_3 = arith.constant 0 : index
    %c0_4 = arith.constant 0 : index
    %4 = vector.load %arg3[%c0_2, %c0_3, %c0_4] : memref<1x8x32xf32, #tpu.memory_space<vmem>>, vector<1x8x32xf32>
    %5 = vector.shape_cast %4 : vector<1x8x32xf32> to vector<8x32xf32>
    %c0_5 = arith.constant 0 : index
    %c0_6 = arith.constant 0 : index
    %c0_7 = arith.constant 0 : index
    %6 = vector.load %arg5[%c0_5, %c0_6, %c0_7] : memref<1x16x32xf32, #tpu.memory_space<vmem>>, vector<1x16x32xf32>
    %7 = vector.shape_cast %6 : vector<1x16x32xf32> to vector<16x32xf32>
    %c0_8 = arith.constant 0 : index
    %c0_9 = arith.constant 0 : index
    %c0_10 = arith.constant 0 : index
    %c0_11 = arith.constant 0 : index
    %8 = vector.load %arg4[%c0_8, %c0_9, %c0_10, %c0_11] : memref<1x8x32x32xf32, #tpu.memory_space<vmem>>, vector<1x1x32x32xf32>
    %9 = vector.shape_cast %8 : vector<1x1x32x32xf32> to vector<32x32xf32>
    %c0_12 = arith.constant 0 : index
    %c1 = arith.constant 1 : index
    %c0_13 = arith.constant 0 : index
    %c0_14 = arith.constant 0 : index
    %10 = vector.load %arg4[%c0_12, %c1, %c0_13, %c0_14] : memref<1x8x32x32xf32, #tpu.memory_space<vmem>>, vector<1x1x32x32xf32>
    %11 = vector.shape_cast %10 : vector<1x1x32x32xf32> to vector<32x32xf32>
    %c0_15 = arith.constant 0 : index
    %c2 = arith.constant 2 : index
    %c0_16 = arith.constant 0 : index
    %c0_17 = arith.constant 0 : index
    %12 = vector.load %arg4[%c0_15, %c2, %c0_16, %c0_17] : memref<1x8x32x32xf32, #tpu.memory_space<vmem>>, vector<1x1x32x32xf32>
    %13 = vector.shape_cast %12 : vector<1x1x32x32xf32> to vector<32x32xf32>
    %14 = vector.extract_strided_slice %7 {offsets = [0, 0], sizes = [1, 32], strides = [1, 1]} : vector<16x32xf32> to vector<1x32xf32>
    %15 = vector.shape_cast %14 : vector<1x32xf32> to vector<32xf32>
    %16 = vector.extract_strided_slice %7 {offsets = [1, 0], sizes = [1, 32], strides = [1, 1]} : vector<16x32xf32> to vector<1x32xf32>
    %17 = vector.shape_cast %16 : vector<1x32xf32> to vector<32xf32>
    %18 = vector.extract_strided_slice %7 {offsets = [2, 0], sizes = [1, 32], strides = [1, 1]} : vector<16x32xf32> to vector<1x32xf32>
    %19 = vector.shape_cast %18 : vector<1x32xf32> to vector<32xf32>
    %c0_18 = arith.constant 0 : index
    %c3 = arith.constant 3 : index
    %c0_19 = arith.constant 0 : index
    %c0_20 = arith.constant 0 : index
    %20 = vector.load %arg4[%c0_18, %c3, %c0_19, %c0_20] : memref<1x8x32x32xf32, #tpu.memory_space<vmem>>, vector<1x1x32x32xf32>
    %21 = vector.shape_cast %20 : vector<1x1x32x32xf32> to vector<32x32xf32>
    %22 = vector.extract_strided_slice %7 {offsets = [3, 0], sizes = [1, 32], strides = [1, 1]} : vector<16x32xf32> to vector<1x32xf32>
    %23 = vector.shape_cast %22 : vector<1x32xf32> to vector<32xf32>
    %cst = arith.constant dense<0.000000e+00> : vector<8x32xf32>
    %24 = tpu.matmul %3, %9, %cst {dimension_numbers = #tpu.dot_dimension_numbers<[1], [0], [0], [1], [0, 0, 1, 1], [], []>} : vector<8x32xf32>, vector<32x32xf32>, vector<8x32xf32> -> vector<8x32xf32>
    %25 = vector.shape_cast %15 : vector<32xf32> to vector<1x32xf32>
    %26 = vector.broadcast %25 : vector<1x32xf32> to vector<8x32xf32>
    %27 = arith.addf %24, %26 : vector<8x32xf32>
    %cst_21 = arith.constant dense<0.000000e+00> : vector<8x32xf32>
    %28 = tpu.matmul %3, %11, %cst_21 {dimension_numbers = #tpu.dot_dimension_numbers<[1], [0], [0], [1], [0, 0, 1, 1], [], []>} : vector<8x32xf32>, vector<32x32xf32>, vector<8x32xf32> -> vector<8x32xf32>
    %29 = vector.shape_cast %17 : vector<32xf32> to vector<1x32xf32>
    %30 = vector.broadcast %29 : vector<1x32xf32> to vector<8x32xf32>
    %31 = arith.addf %28, %30 : vector<8x32xf32>
    %cst_22 = arith.constant dense<0.000000e+00> : vector<8x32xf32>
    %32 = tpu.matmul %3, %13, %cst_22 {dimension_numbers = #tpu.dot_dimension_numbers<[1], [0], [0], [1], [0, 0, 1, 1], [], []>} : vector<8x32xf32>, vector<32x32xf32>, vector<8x32xf32> -> vector<8x32xf32>
    %33 = vector.shape_cast %19 : vector<32xf32> to vector<1x32xf32>
    %34 = vector.broadcast %33 : vector<1x32xf32> to vector<8x32xf32>
    %35 = arith.addf %32, %34 : vector<8x32xf32>
    %36 = vector.shape_cast %27 : vector<8x32xf32> to vector<8x4x8xf32>
    %cst_23 = arith.constant 0.353553385 : f32
    %37 = vector.broadcast %cst_23 : f32 to vector<8x4x8xf32>
    %38 = arith.mulf %36, %37 : vector<8x4x8xf32>
    %39 = vector.shape_cast %31 : vector<8x32xf32> to vector<8x4x8xf32>
    %40 = vector.shape_cast %35 : vector<8x32xf32> to vector<8x4x8xf32>
    "tpu.trace_start"() <{level = 10 : i32, message = "qhd,khd->hqk"}> : () -> ()
    %cst_24 = arith.constant dense<0.000000e+00> : vector<4x8x8xf32>
    %41 = tpu.matmul %38, %39, %cst_24 {dimension_numbers = #tpu.dot_dimension_numbers<[2], [2], [0], [0], [0, 1, 0, 0, 1, 0], [1], [1]>} : vector<8x4x8xf32>, vector<8x4x8xf32>, vector<4x8x8xf32> -> vector<4x8x8xf32>
    "tpu.trace_stop"() : () -> ()
    %cst_25 = arith.constant dense<0xFF800000> : vector<4x8xf32>
    %42 = vector.multi_reduction <maximumf>, %41, %cst_25 [2] : vector<4x8x8xf32> to vector<4x8xf32>
    %43 = vector.shape_cast %42 : vector<4x8xf32> to vector<4x8x1xf32>
    %44 = vector.broadcast %43 : vector<4x8x1xf32> to vector<4x8x8xf32>
    %45 = arith.subf %41, %44 : vector<4x8x8xf32>
    %46 = math.exp %45 : vector<4x8x8xf32>
    %cst_26 = arith.constant dense<0.000000e+00> : vector<4x8xf32>
    %47 = vector.multi_reduction <add>, %46, %cst_26 [2] : vector<4x8x8xf32> to vector<4x8xf32>
    %48 = vector.shape_cast %47 : vector<4x8xf32> to vector<4x8x1xf32>
    %49 = tpu.reciprocal %48 {approx = true} : vector<4x8x1xf32> -> vector<4x8x1xf32>
    %50 = vector.broadcast %49 : vector<4x8x1xf32> to vector<4x8x8xf32>
    %51 = arith.mulf %46, %50 : vector<4x8x8xf32>
    "tpu.trace_start"() <{level = 10 : i32, message = "hqk,khd->qhd"}> : () -> ()
    %cst_27 = arith.constant dense<0.000000e+00> : vector<4x8x8xf32>
    %52 = tpu.matmul %40, %51, %cst_27 {dimension_numbers = #tpu.dot_dimension_numbers<[0], [2], [2], [1], [0, 1, 0, 2, 1, 1], [1], [0]>} : vector<8x4x8xf32>, vector<4x8x8xf32>, vector<4x8x8xf32> -> vector<4x8x8xf32>
    %53 = tpu.transpose %52, [2, 0, 1] : vector<4x8x8xf32> -> vector<8x4x8xf32>
    "tpu.trace_stop"() : () -> ()
    %54 = vector.shape_cast %53 : vector<8x4x8xf32> to vector<8x32xf32>
    %cst_28 = arith.constant dense<0.000000e+00> : vector<8x32xf32>
    %55 = tpu.matmul %54, %21, %cst_28 {dimension_numbers = #tpu.dot_dimension_numbers<[1], [0], [0], [1], [0, 0, 1, 1], [], []>} : vector<8x32xf32>, vector<32x32xf32>, vector<8x32xf32> -> vector<8x32xf32>
    %56 = vector.shape_cast %23 : vector<32xf32> to vector<1x32xf32>
    %57 = vector.broadcast %56 : vector<1x32xf32> to vector<8x32xf32>
    %58 = arith.addf %55, %57 : vector<8x32xf32>
    %59 = arith.addf %3, %58 : vector<8x32xf32>
    %60 = vector.extract_strided_slice %7 {offsets = [9, 0], sizes = [1, 32], strides = [1, 1]} : vector<16x32xf32> to vector<1x32xf32>
    %61 = vector.shape_cast %60 : vector<1x32xf32> to vector<32xf32>
    %62 = vector.extract_strided_slice %7 {offsets = [10, 0], sizes = [1, 32], strides = [1, 1]} : vector<16x32xf32> to vector<1x32xf32>
    %63 = vector.shape_cast %62 : vector<1x32xf32> to vector<32xf32>
    %cst_29 = arith.constant dense<0.000000e+00> : vector<8xf32>
    %64 = vector.multi_reduction <add>, %59, %cst_29 [1] : vector<8x32xf32> to vector<8xf32>
    %65 = vector.shape_cast %64 : vector<8xf32> to vector<8x1xf32>
    %cst_30 = arith.constant 3.200000e+01 : f32
    %66 = vector.broadcast %cst_30 : f32 to vector<8x1xf32>
    %67 = arith.divf %65, %66 : vector<8x1xf32>
    %68 = vector.broadcast %67 : vector<8x1xf32> to vector<8x32xf32>
    %69 = arith.subf %59, %68 : vector<8x32xf32>
    %70 = arith.mulf %69, %69 : vector<8x32xf32>
    %cst_31 = arith.constant dense<0.000000e+00> : vector<8xf32>
    %71 = vector.multi_reduction <add>, %70, %cst_31 [1] : vector<8x32xf32> to vector<8xf32>
    %72 = vector.shape_cast %71 : vector<8xf32> to vector<8x1xf32>
    %cst_32 = arith.constant 3.200000e+01 : f32
    %73 = vector.broadcast %cst_32 : f32 to vector<8x1xf32>
    %74 = arith.divf %72, %73 : vector<8x1xf32>
    %75 = vector.broadcast %67 : vector<8x1xf32> to vector<8x32xf32>
    %76 = arith.subf %59, %75 : vector<8x32xf32>
    %cst_33 = arith.constant 9.99999974E-6 : f32
    %77 = vector.broadcast %cst_33 : f32 to vector<8x1xf32>
    %78 = arith.addf %74, %77 : vector<8x1xf32>
    %79 = math.rsqrt %78 : vector<8x1xf32>
    %80 = vector.broadcast %79 : vector<8x1xf32> to vector<8x32xf32>
    %81 = arith.mulf %76, %80 : vector<8x32xf32>
    %82 = vector.shape_cast %61 : vector<32xf32> to vector<1x32xf32>
    %83 = vector.broadcast %82 : vector<1x32xf32> to vector<8x32xf32>
    %84 = arith.mulf %81, %83 : vector<8x32xf32>
    %85 = vector.shape_cast %63 : vector<32xf32> to vector<1x32xf32>
    %86 = vector.broadcast %85 : vector<1x32xf32> to vector<8x32xf32>
    %87 = arith.addf %84, %86 : vector<8x32xf32>
    %c0_34 = arith.constant 0 : index
    %c4 = arith.constant 4 : index
    %c0_35 = arith.constant 0 : index
    %c0_36 = arith.constant 0 : index
    %88 = vector.load %arg4[%c0_34, %c4, %c0_35, %c0_36] : memref<1x8x32x32xf32, #tpu.memory_space<vmem>>, vector<1x1x32x32xf32>
    %89 = vector.shape_cast %88 : vector<1x1x32x32xf32> to vector<32x32xf32>
    %c0_37 = arith.constant 0 : index
    %c5 = arith.constant 5 : index
    %c0_38 = arith.constant 0 : index
    %c0_39 = arith.constant 0 : index
    %90 = vector.load %arg4[%c0_37, %c5, %c0_38, %c0_39] : memref<1x8x32x32xf32, #tpu.memory_space<vmem>>, vector<1x1x32x32xf32>
    %91 = vector.shape_cast %90 : vector<1x1x32x32xf32> to vector<32x32xf32>
    %c0_40 = arith.constant 0 : index
    %c6 = arith.constant 6 : index
    %c0_41 = arith.constant 0 : index
    %c0_42 = arith.constant 0 : index
    %92 = vector.load %arg4[%c0_40, %c6, %c0_41, %c0_42] : memref<1x8x32x32xf32, #tpu.memory_space<vmem>>, vector<1x1x32x32xf32>
    %93 = vector.shape_cast %92 : vector<1x1x32x32xf32> to vector<32x32xf32>
    %94 = vector.extract_strided_slice %7 {offsets = [4, 0], sizes = [1, 32], strides = [1, 1]} : vector<16x32xf32> to vector<1x32xf32>
    %95 = vector.shape_cast %94 : vector<1x32xf32> to vector<32xf32>
    %96 = vector.extract_strided_slice %7 {offsets = [5, 0], sizes = [1, 32], strides = [1, 1]} : vector<16x32xf32> to vector<1x32xf32>
    %97 = vector.shape_cast %96 : vector<1x32xf32> to vector<32xf32>
    %98 = vector.extract_strided_slice %7 {offsets = [6, 0], sizes = [1, 32], strides = [1, 1]} : vector<16x32xf32> to vector<1x32xf32>
    %99 = vector.shape_cast %98 : vector<1x32xf32> to vector<32xf32>
    %c0_43 = arith.constant 0 : index
    %c7 = arith.constant 7 : index
    %c0_44 = arith.constant 0 : index
    %c0_45 = arith.constant 0 : index
    %100 = vector.load %arg4[%c0_43, %c7, %c0_44, %c0_45] : memref<1x8x32x32xf32, #tpu.memory_space<vmem>>, vector<1x1x32x32xf32>
    %101 = vector.shape_cast %100 : vector<1x1x32x32xf32> to vector<32x32xf32>
    %102 = vector.extract_strided_slice %7 {offsets = [7, 0], sizes = [1, 32], strides = [1, 1]} : vector<16x32xf32> to vector<1x32xf32>
    %103 = vector.shape_cast %102 : vector<1x32xf32> to vector<32xf32>
    %cst_46 = arith.constant dense<0.000000e+00> : vector<8x32xf32>
    %104 = tpu.matmul %87, %89, %cst_46 {dimension_numbers = #tpu.dot_dimension_numbers<[1], [0], [0], [1], [0, 0, 1, 1], [], []>} : vector<8x32xf32>, vector<32x32xf32>, vector<8x32xf32> -> vector<8x32xf32>
    %105 = vector.shape_cast %95 : vector<32xf32> to vector<1x32xf32>
    %106 = vector.broadcast %105 : vector<1x32xf32> to vector<8x32xf32>
    %107 = arith.addf %104, %106 : vector<8x32xf32>
    %cst_47 = arith.constant dense<0.000000e+00> : vector<8x32xf32>
    %108 = tpu.matmul %5, %91, %cst_47 {dimension_numbers = #tpu.dot_dimension_numbers<[1], [0], [0], [1], [0, 0, 1, 1], [], []>} : vector<8x32xf32>, vector<32x32xf32>, vector<8x32xf32> -> vector<8x32xf32>
    %109 = vector.shape_cast %97 : vector<32xf32> to vector<1x32xf32>
    %110 = vector.broadcast %109 : vector<1x32xf32> to vector<8x32xf32>
    %111 = arith.addf %108, %110 : vector<8x32xf32>
    %cst_48 = arith.constant dense<0.000000e+00> : vector<8x32xf32>
    %112 = tpu.matmul %5, %93, %cst_48 {dimension_numbers = #tpu.dot_dimension_numbers<[1], [0], [0], [1], [0, 0, 1, 1], [], []>} : vector<8x32xf32>, vector<32x32xf32>, vector<8x32xf32> -> vector<8x32xf32>
    %113 = vector.shape_cast %99 : vector<32xf32> to vector<1x32xf32>
    %114 = vector.broadcast %113 : vector<1x32xf32> to vector<8x32xf32>
    %115 = arith.addf %112, %114 : vector<8x32xf32>
    %116 = vector.shape_cast %107 : vector<8x32xf32> to vector<8x4x8xf32>
    %cst_49 = arith.constant 0.353553385 : f32
    %117 = vector.broadcast %cst_49 : f32 to vector<8x4x8xf32>
    %118 = arith.mulf %116, %117 : vector<8x4x8xf32>
    %119 = vector.shape_cast %111 : vector<8x32xf32> to vector<8x4x8xf32>
    %120 = vector.shape_cast %115 : vector<8x32xf32> to vector<8x4x8xf32>
    "tpu.trace_start"() <{level = 10 : i32, message = "qhd,khd->hqk"}> : () -> ()
    %cst_50 = arith.constant dense<0.000000e+00> : vector<4x8x8xf32>
    %121 = tpu.matmul %118, %119, %cst_50 {dimension_numbers = #tpu.dot_dimension_numbers<[2], [2], [0], [0], [0, 1, 0, 0, 1, 0], [1], [1]>} : vector<8x4x8xf32>, vector<8x4x8xf32>, vector<4x8x8xf32> -> vector<4x8x8xf32>
    "tpu.trace_stop"() : () -> ()
    %cst_51 = arith.constant dense<0xFF800000> : vector<4x8xf32>
    %122 = vector.multi_reduction <maximumf>, %121, %cst_51 [2] : vector<4x8x8xf32> to vector<4x8xf32>
    %123 = vector.shape_cast %122 : vector<4x8xf32> to vector<4x8x1xf32>
    %124 = vector.broadcast %123 : vector<4x8x1xf32> to vector<4x8x8xf32>
    %125 = arith.subf %121, %124 : vector<4x8x8xf32>
    %126 = math.exp %125 : vector<4x8x8xf32>
    %cst_52 = arith.constant dense<0.000000e+00> : vector<4x8xf32>
    %127 = vector.multi_reduction <add>, %126, %cst_52 [2] : vector<4x8x8xf32> to vector<4x8xf32>
    %128 = vector.shape_cast %127 : vector<4x8xf32> to vector<4x8x1xf32>
    %129 = tpu.reciprocal %128 {approx = true} : vector<4x8x1xf32> -> vector<4x8x1xf32>
    %130 = vector.broadcast %129 : vector<4x8x1xf32> to vector<4x8x8xf32>
    %131 = arith.mulf %126, %130 : vector<4x8x8xf32>
    "tpu.trace_start"() <{level = 10 : i32, message = "hqk,khd->qhd"}> : () -> ()
    %cst_53 = arith.constant dense<0.000000e+00> : vector<4x8x8xf32>
    %132 = tpu.matmul %120, %131, %cst_53 {dimension_numbers = #tpu.dot_dimension_numbers<[0], [2], [2], [1], [0, 1, 0, 2, 1, 1], [1], [0]>} : vector<8x4x8xf32>, vector<4x8x8xf32>, vector<4x8x8xf32> -> vector<4x8x8xf32>
    %133 = tpu.transpose %132, [2, 0, 1] : vector<4x8x8xf32> -> vector<8x4x8xf32>
    "tpu.trace_stop"() : () -> ()
    %134 = vector.shape_cast %133 : vector<8x4x8xf32> to vector<8x32xf32>
    %cst_54 = arith.constant dense<0.000000e+00> : vector<8x32xf32>
    %135 = tpu.matmul %134, %101, %cst_54 {dimension_numbers = #tpu.dot_dimension_numbers<[1], [0], [0], [1], [0, 0, 1, 1], [], []>} : vector<8x32xf32>, vector<32x32xf32>, vector<8x32xf32> -> vector<8x32xf32>
    %136 = vector.shape_cast %103 : vector<32xf32> to vector<1x32xf32>
    %137 = vector.broadcast %136 : vector<1x32xf32> to vector<8x32xf32>
    %138 = arith.addf %135, %137 : vector<8x32xf32>
    %139 = arith.addf %87, %138 : vector<8x32xf32>
    %140 = vector.extract_strided_slice %7 {offsets = [11, 0], sizes = [1, 32], strides = [1, 1]} : vector<16x32xf32> to vector<1x32xf32>
    %141 = vector.shape_cast %140 : vector<1x32xf32> to vector<32xf32>
    %142 = vector.extract_strided_slice %7 {offsets = [12, 0], sizes = [1, 32], strides = [1, 1]} : vector<16x32xf32> to vector<1x32xf32>
    %143 = vector.shape_cast %142 : vector<1x32xf32> to vector<32xf32>
    %cst_55 = arith.constant dense<0.000000e+00> : vector<8xf32>
    %144 = vector.multi_reduction <add>, %139, %cst_55 [1] : vector<8x32xf32> to vector<8xf32>
    %145 = vector.shape_cast %144 : vector<8xf32> to vector<8x1xf32>
    %cst_56 = arith.constant 3.200000e+01 : f32
    %146 = vector.broadcast %cst_56 : f32 to vector<8x1xf32>
    %147 = arith.divf %145, %146 : vector<8x1xf32>
    %148 = vector.broadcast %147 : vector<8x1xf32> to vector<8x32xf32>
    %149 = arith.subf %139, %148 : vector<8x32xf32>
    %150 = arith.mulf %149, %149 : vector<8x32xf32>
    %cst_57 = arith.constant dense<0.000000e+00> : vector<8xf32>
    %151 = vector.multi_reduction <add>, %150, %cst_57 [1] : vector<8x32xf32> to vector<8xf32>
    %152 = vector.shape_cast %151 : vector<8xf32> to vector<8x1xf32>
    %cst_58 = arith.constant 3.200000e+01 : f32
    %153 = vector.broadcast %cst_58 : f32 to vector<8x1xf32>
    %154 = arith.divf %152, %153 : vector<8x1xf32>
    %155 = vector.broadcast %147 : vector<8x1xf32> to vector<8x32xf32>
    %156 = arith.subf %139, %155 : vector<8x32xf32>
    %cst_59 = arith.constant 9.99999974E-6 : f32
    %157 = vector.broadcast %cst_59 : f32 to vector<8x1xf32>
    %158 = arith.addf %154, %157 : vector<8x1xf32>
    %159 = math.rsqrt %158 : vector<8x1xf32>
    %160 = vector.broadcast %159 : vector<8x1xf32> to vector<8x32xf32>
    %161 = arith.mulf %156, %160 : vector<8x32xf32>
    %162 = vector.shape_cast %141 : vector<32xf32> to vector<1x32xf32>
    %163 = vector.broadcast %162 : vector<1x32xf32> to vector<8x32xf32>
    %164 = arith.mulf %161, %163 : vector<8x32xf32>
    %165 = vector.shape_cast %143 : vector<32xf32> to vector<1x32xf32>
    %166 = vector.broadcast %165 : vector<1x32xf32> to vector<8x32xf32>
    %167 = arith.addf %164, %166 : vector<8x32xf32>
    %c0_60 = arith.constant 0 : index
    %c0_61 = arith.constant 0 : index
    %c0_62 = arith.constant 0 : index
    %168 = vector.load %arg6[%c0_60, %c0_61, %c0_62] : memref<1x32x128xf32, #tpu.memory_space<vmem>>, vector<1x32x128xf32>
    %169 = vector.shape_cast %168 : vector<1x32x128xf32> to vector<32x128xf32>
    %cst_63 = arith.constant dense<0.000000e+00> : vector<8x128xf32>
    %170 = tpu.matmul %167, %169, %cst_63 {dimension_numbers = #tpu.dot_dimension_numbers<[1], [0], [0], [1], [0, 0, 1, 1], [], []>} : vector<8x32xf32>, vector<32x128xf32>, vector<8x128xf32> -> vector<8x128xf32>
    %c0_64 = arith.constant 0 : index
    %c0_65 = arith.constant 0 : index
    %c0_66 = arith.constant 0 : index
    %171 = vector.load %arg7[%c0_64, %c0_65, %c0_66] : memref<1x1x128xf32, #tpu.memory_space<vmem>>, vector<1x1x128xf32>
    %172 = vector.shape_cast %171 : vector<1x1x128xf32> to vector<1x128xf32>
    %173 = vector.broadcast %172 : vector<1x128xf32> to vector<8x128xf32>
    %174 = arith.addf %170, %173 : vector<8x128xf32>
    %cst_67 = arith.constant 0.000000e+00 : f32
    %175 = vector.broadcast %cst_67 : f32 to vector<8x128xf32>
    %176 = arith.maximumf %174, %175 : vector<8x128xf32>
    %c0_68 = arith.constant 0 : index
    %c0_69 = arith.constant 0 : index
    %c0_70 = arith.constant 0 : index
    %177 = vector.load %arg8[%c0_68, %c0_69, %c0_70] : memref<1x128x32xf32, #tpu.memory_space<vmem>>, vector<1x128x32xf32>
    %178 = vector.shape_cast %177 : vector<1x128x32xf32> to vector<128x32xf32>
    %cst_71 = arith.constant dense<0.000000e+00> : vector<8x32xf32>
    %179 = tpu.matmul %176, %178, %cst_71 {dimension_numbers = #tpu.dot_dimension_numbers<[1], [0], [0], [1], [0, 0, 1, 1], [], []>} : vector<8x128xf32>, vector<128x32xf32>, vector<8x32xf32> -> vector<8x32xf32>
    %180 = vector.extract_strided_slice %7 {offsets = [8, 0], sizes = [1, 32], strides = [1, 1]} : vector<16x32xf32> to vector<1x32xf32>
    %181 = vector.shape_cast %180 : vector<1x32xf32> to vector<32xf32>
    %182 = vector.shape_cast %181 : vector<32xf32> to vector<1x32xf32>
    %183 = vector.broadcast %182 : vector<1x32xf32> to vector<8x32xf32>
    %184 = arith.addf %179, %183 : vector<8x32xf32>
    %185 = arith.addf %167, %184 : vector<8x32xf32>
    %186 = vector.extract_strided_slice %7 {offsets = [13, 0], sizes = [1, 32], strides = [1, 1]} : vector<16x32xf32> to vector<1x32xf32>
    %187 = vector.shape_cast %186 : vector<1x32xf32> to vector<32xf32>
    %188 = vector.extract_strided_slice %7 {offsets = [14, 0], sizes = [1, 32], strides = [1, 1]} : vector<16x32xf32> to vector<1x32xf32>
    %189 = vector.shape_cast %188 : vector<1x32xf32> to vector<32xf32>
    %cst_72 = arith.constant dense<0.000000e+00> : vector<8xf32>
    %190 = vector.multi_reduction <add>, %185, %cst_72 [1] : vector<8x32xf32> to vector<8xf32>
    %191 = vector.shape_cast %190 : vector<8xf32> to vector<8x1xf32>
    %cst_73 = arith.constant 3.200000e+01 : f32
    %192 = vector.broadcast %cst_73 : f32 to vector<8x1xf32>
    %193 = arith.divf %191, %192 : vector<8x1xf32>
    %194 = vector.broadcast %193 : vector<8x1xf32> to vector<8x32xf32>
    %195 = arith.subf %185, %194 : vector<8x32xf32>
    %196 = arith.mulf %195, %195 : vector<8x32xf32>
    %cst_74 = arith.constant dense<0.000000e+00> : vector<8xf32>
    %197 = vector.multi_reduction <add>, %196, %cst_74 [1] : vector<8x32xf32> to vector<8xf32>
    %198 = vector.shape_cast %197 : vector<8xf32> to vector<8x1xf32>
    %cst_75 = arith.constant 3.200000e+01 : f32
    %199 = vector.broadcast %cst_75 : f32 to vector<8x1xf32>
    %200 = arith.divf %198, %199 : vector<8x1xf32>
    %201 = vector.broadcast %193 : vector<8x1xf32> to vector<8x32xf32>
    %202 = arith.subf %185, %201 : vector<8x32xf32>
    %cst_76 = arith.constant 9.99999974E-6 : f32
    %203 = vector.broadcast %cst_76 : f32 to vector<8x1xf32>
    %204 = arith.addf %200, %203 : vector<8x1xf32>
    %205 = math.rsqrt %204 : vector<8x1xf32>
    %206 = vector.broadcast %205 : vector<8x1xf32> to vector<8x32xf32>
    %207 = arith.mulf %202, %206 : vector<8x32xf32>
    %208 = vector.shape_cast %187 : vector<32xf32> to vector<1x32xf32>
    %209 = vector.broadcast %208 : vector<1x32xf32> to vector<8x32xf32>
    %210 = arith.mulf %207, %209 : vector<8x32xf32>
    %211 = vector.shape_cast %189 : vector<32xf32> to vector<1x32xf32>
    %212 = vector.broadcast %211 : vector<1x32xf32> to vector<8x32xf32>
    %213 = arith.addf %210, %212 : vector<8x32xf32>
    %c0_77 = arith.constant 0 : index
    %c0_78 = arith.constant 0 : index
    %214 = vector.load %arg12[%c0_77, %c0_78] : memref<8x32xf32, #tpu.memory_space<vmem>>, vector<8x32xf32>
    tpu.vector_store %arg12[%c0_77, %c0_78], %213 {strides = array<i32>} : memref<8x32xf32, #tpu.memory_space<vmem>>, vector<8x32xf32>,
    %c1_i32 = arith.constant 1 : i32
    %215 = arith.cmpi eq, %arg1, %c1_i32 : i32
    %216 = arith.extui %215 : i1 to i32
    %c0_i32_79 = arith.constant 0 : i32
    %217 = arith.cmpi ne, %216, %c0_i32_79 : i32
    scf.if %217 {
      %c0_80 = arith.constant 0 : index
      %c0_81 = arith.constant 0 : index
      %218 = vector.load %arg9[%c0_80, %c0_81] : memref<32x128xf32, #tpu.memory_space<vmem>>, vector<32x128xf32>
      %cst_82 = arith.constant dense<0.000000e+00> : vector<8x128xf32>
      %219 = tpu.matmul %213, %218, %cst_82 {dimension_numbers = #tpu.dot_dimension_numbers<[1], [0], [0], [1], [0, 0, 1, 1], [], []>} : vector<8x32xf32>, vector<32x128xf32>, vector<8x128xf32> -> vector<8x128xf32>
      %c0_83 = arith.constant 0 : index
      %c0_84 = arith.constant 0 : index
      %220 = vector.load %arg10[%c0_83, %c0_84] : memref<1x128xf32, #tpu.memory_space<vmem>>, vector<1x128xf32>
      %221 = vector.broadcast %220 : vector<1x128xf32> to vector<8x128xf32>
      %222 = arith.addf %219, %221 : vector<8x128xf32>
      %c0_85 = arith.constant 0 : index
      %c0_86 = arith.constant 0 : index
      %c0_87 = arith.constant 0 : index
      %223 = vector.load %arg11[%c0_85, %c0_86, %c0_87] : memref<1x8x128xf32, #tpu.memory_space<vmem>>, vector<1x8x128xf32>
      %224 = vector.shape_cast %223 : vector<1x8x128xf32> to vector<8x128xf32>
      %225 = vector.shape_cast %222 : vector<8x128xf32> to vector<1x8x128xf32>
      tpu.vector_store %arg11[%c0_85, %c0_86, %c0_87], %225 {strides = array<i32>} : memref<1x8x128xf32, #tpu.memory_space<vmem>>, vector<1x8x128xf32>,
    } else {
    }
    return
  }
  func.func @transform_0(%arg0: i32, %arg1: i32) -> (i32, i32, i32) {
    %c0_i32 = arith.constant 0 : i32
    %c0_i32_0 = arith.constant 0 : i32
    %c0_i32_1 = arith.constant 0 : i32
    return %arg0, %c0_i32, %c0_i32_0 : i32, i32, i32
  }
  func.func @transform_1(%arg0: i32, %arg1: i32) -> (i32, i32, i32) {
    %c0_i32 = arith.constant 0 : i32
    %c0_i32_0 = arith.constant 0 : i32
    %c0_i32_1 = arith.constant 0 : i32
    return %arg0, %c0_i32, %c0_i32_0 : i32, i32, i32
  }
  func.func @transform_2(%arg0: i32, %arg1: i32) -> (i32, i32, i32, i32) {
    %c0_i32 = arith.constant 0 : i32
    %c0_i32_0 = arith.constant 0 : i32
    %c0_i32_1 = arith.constant 0 : i32
    %c0_i32_2 = arith.constant 0 : i32
    return %arg1, %c0_i32, %c0_i32_0, %c0_i32_1 : i32, i32, i32, i32
  }
  func.func @transform_3(%arg0: i32, %arg1: i32) -> (i32, i32, i32) {
    %c0_i32 = arith.constant 0 : i32
    %c0_i32_0 = arith.constant 0 : i32
    %c0_i32_1 = arith.constant 0 : i32
    return %arg1, %c0_i32, %c0_i32_0 : i32, i32, i32
  }
  func.func @transform_4(%arg0: i32, %arg1: i32) -> (i32, i32, i32) {
    %c0_i32 = arith.constant 0 : i32
    %c0_i32_0 = arith.constant 0 : i32
    %c0_i32_1 = arith.constant 0 : i32
    return %arg1, %c0_i32, %c0_i32_0 : i32, i32, i32
  }
  func.func @transform_5(%arg0: i32, %arg1: i32) -> (i32, i32, i32) {
    %c0_i32 = arith.constant 0 : i32
    %c0_i32_0 = arith.constant 0 : i32
    %c0_i32_1 = arith.constant 0 : i32
    return %arg1, %c0_i32, %c0_i32_0 : i32, i32, i32
  }
  func.func @transform_6(%arg0: i32, %arg1: i32) -> (i32, i32, i32) {
    %c0_i32 = arith.constant 0 : i32
    %c0_i32_0 = arith.constant 0 : i32
    %c0_i32_1 = arith.constant 0 : i32
    return %arg1, %c0_i32, %c0_i32_0 : i32, i32, i32
  }
  func.func @transform_7(%arg0: i32, %arg1: i32) -> (i32, i32) {
    %c0_i32 = arith.constant 0 : i32
    %c0_i32_0 = arith.constant 0 : i32
    %c0_i32_1 = arith.constant 0 : i32
    return %c0_i32, %c0_i32_0 : i32, i32
  }
  func.func @transform_8(%arg0: i32, %arg1: i32) -> (i32, i32) {
    %c0_i32 = arith.constant 0 : i32
    %c0_i32_0 = arith.constant 0 : i32
    %c0_i32_1 = arith.constant 0 : i32
    return %c0_i32, %c0_i32_0 : i32, i32
  }
  func.func @transform_9(%arg0: i32, %arg1: i32) -> (i32, i32, i32) {
    %c0_i32 = arith.constant 0 : i32
    %c0_i32_0 = arith.constant 0 : i32
    %c0_i32_1 = arith.constant 0 : i32
    return %arg0, %c0_i32, %c0_i32_0 : i32, i32, i32
  }
}

</mosaic_0001>

<bundles_post_ra>
// kernel: tpu_custom_call.1
= control target key start
LH: loop header
LB: loop body
LE: loop exit
PB: predicated region body
PF: predicated region fallthrough
CT: control target
= control target key end

     0   :  { %s5881_s0 = inlined_call_operand.vmem [shape: f32[2,8,32], index: 0, kind: input, shape index: {}]   ;;  %s5882_s1 = inlined_call_operand.vmem [shape: f32[2,8,32], index: 1, kind: input, shape index: {}]   ;;  %s5883_s2 = inlined_call_operand.hbm [shape: f32[2,8,32,32], index: 2, kind: input, shape index: {}]   ;;  %s5884_s3 = inlined_call_operand.vmem [shape: f32[2,16,32], index: 3, kind: input, shape index: {}]   ;;  %s5885_s4 = inlined_call_operand.vmem [shape: f32[2,32,128], index: 4, kind: input, shape index: {}]   ;;  %s5886_s5 = inlined_call_operand.vmem [shape: f32[2,1,128], index: 5, kind: input, shape index: {}]   ;;  %s5887_s6 = inlined_call_operand.vmem [shape: f32[2,128,32], index: 6, kind: input, shape index: {}]   ;;  %s5888_s7 = inlined_call_operand.vmem [shape: f32[32,128], index: 7, kind: input, shape index: {}]   ;;  %s5889_s8 = inlined_call_operand.vmem [shape: f32[1,128], index: 8, kind: input, shape index: {}]   ;;  %s5890_s9 = inlined_call_operand.hbm [shape: f32[2,8,128], index: 9, kind: output, shape index: {}]  }
   0x1   :  { %5905 = sst [smem:[#allocation21_spill]] %s5881_s0 }
   0x2   :  { %5906 = sst [smem:[#allocation22_spill]] %s5882_s1 }
   0x3   :  { %5907 = sst [smem:[#allocation23_spill]] %s5883_s2 }
   0x4   :  { %5908 = sst [smem:[#allocation24_spill]] %s5890_s9 }
   0x5   :  { %14 = vsyncpa [#allocation4], 0 }
   0x6   :  { %16 = vsyncpa [#allocation4 + $0x1], 0 }
   0x7   :  { %17 = vsyncpa [#allocation5], 0 }
   0x8   :  { %19 = vsyncpa [#allocation5 + $0x1], 0  ;;  %s5215_s30 = smov 0   ;;  %s5217_s10 = smov 0  }
   0x9   :  { %s5219_s11 = smov 0   ;;  %s5221_s12 = smov 0  }
   0xa   :  { %s5223_s13 = smov 0   ;;  %s5225_s14 = smov 0  }
   0xb   :  { %s5227_s15 = smov 0   ;;  %s5229_s16 = smov 0  }
   0xc   :  { %s5231_s17 = smov 0   ;;  %s5233_s18 = smov 0  }
   0xd   :  { %s5235_s19 = smov 0  }
   0xe LB: > { %5909 = sst [smem:[#allocation9_spill]] %s5105_s30  ;;  %s4332_s20 = sadd.s32 4294967295, %s5145_s19   ;;  %s5145_s19 = sphi %s5235_s19, %s25_s19   ;;  %s5141_s18 = sphi %s5233_s18, %s5944_s18   ;;  %s5137_s17 = sphi %s5231_s17, %s5943_s17   ;;  %s5133_s16 = sphi %s5229_s16, %s5942_s16   ;;  %s5129_s15 = sphi %s5227_s15, %s5941_s15   ;;  %s5125_s14 = sphi %s5225_s14, %s5940_s14   ;;  %s5121_s13 = sphi %s5223_s13, %s5939_s13   ;;  %s5117_s12 = sphi %s5221_s12, %s5938_s12   ;;  %s5113_s11 = sphi %s5219_s11, %s5937_s11   ;;  %s5109_s10 = sphi %s5217_s10, %s5946_s10   ;;  %s5105_s30 = sphi %s5215_s30, %s5945_s30  }
   0xf   : > { %5910 = sst [smem:[#allocation10_spill]] %s5113_s11  ;;  %s4333_s21 = sadd.s32 4294967294, %s5145_s19  }
  0x10   : > { %5911 = sst [smem:[#allocation11_spill]] %s5121_s13  ;;  %s34_s22 = sadd.s32 1, %s5137_s17 }
  0x11   : > { %5912 = sst [smem:[#allocation12_spill]] %s5125_s14  ;;  %s37_s23 = sadd.s32 1, %s5141_s18 }
  0x12   : > { %5913 = sst [smem:[#allocation13_spill]] %s5137_s17  ;;  %p35_p0 = scmp.ge.s32.totalorder %s34_s22, 2 }
  0x13   : > { %5914 = sst [smem:[#allocation14_spill]] %s5141_s18  ;;  %s96_s24 = sadd.s32 1, %s5125_s14 }
  0x14   : > { %5915 = sst [smem:[#allocation15_spill]] %s5145_s19  ;;  %p103_p1 = scmp.ne.s32.totalorder %s5125_s14, %s5121_s13 }
  0x15   : > { %p104_p2 = scmp.eq.s32.totalorder %s5145_s19, 0  ;;  %s5948_s22 = smov (%p35_p0, %s34_s22), 0 }
  0x16   : > { %5916 = sst [smem:[#allocation16_spill]] %s5948_s22  ;;  %s5950_s23 = smov (!%p35_p0, %s37_s23), %s5141_s18 }
  0x17   : > { %s93_s25 = ssub.s32 %s5137_s17, %s5948_s22  ;;  %p5281_p3 = por %p104_p2, %p103_p1 }
  0x18   : > { %p39_p4 = scmp.ge.s32.totalorder %s5950_s23, 2  ;;  %p94_p5 = scmp.eq.s32.totalorder %s93_s25, 0 }
  0x19   : > { %p109_p6 = scmp.ne.s32.totalorder %s5121_s13, %s5117_s12  ;;  %p110_p7 = scmp.eq.s32.totalorder %s4332_s20, 0 }
  0x1a   : > { %s5952_s23 = smov (%p39_p4, %s5950_s23), 0  ;;  %s268_s22 = sadd.s32 1, %s5113_s11 }
  0x1b   : > { %5918 = sst [smem:[#allocation17_spill]] %s5952_s23  ;;  %p5291_p8 = por %p110_p7, %p109_p6 }
  0x1c   : > { %s5289_s27 = scalar_select %p94_p5, %s5125_s14, %s96_s24  }
  0x1d   : > { %s265_s29 = ssub.s32 %s5141_s18, %s5952_s23  ;;  %p278_p10 = scmp.ne.s32.totalorder %s5113_s11, %s5109_s10 }
  0x1e   : > { %5919 = sst [smem:[#allocation18_spill]] %s5289_s27  ;;  %p266_p9 = scmp.eq.s32.totalorder %s265_s29, 0 }
  0x1f   : > { %p279_p11 = scmp.eq.s32.totalorder %s4332_s20, 3  ;;  %p284_p13 = scmp.ne.s32.totalorder %s5109_s10, %s5105_s30 }
  0x20   : > { %s5301_s25 = scalar_select %p266_p9, %s5113_s11, %s268_s22  }
  0x21   : > { %p5303_p12 = por %p279_p11, %p278_p10  ;;  %p285_p0 = scmp.eq.s32.totalorder %s4333_s21, 3 }
  0x22   : > { %5921 = sst [smem:[#allocation19_spill]] %s5301_s25  ;;  %p4848_p1 = scmp.lt.s32.totalorder %s5145_s19, 4 }
  0x23   : > { %s5922_s12 = scalar_select %p5303_p12, 1, 0 }
  0x24   : > { %s325_s24 = sand.u32 1, %s5125_s14   ;;  %p5311_p2 = por %p285_p0, %p284_p13 }
  0x25   : > { %s4336_s23 = sshll.u32 %s325_s24, 8  ;;  %s4424_s29 = sshll.u32 %s5137_s17, 12 }
  0x26   : > { %s5923_s27 = scalar_select %p5311_p2, 1, 0 }
  0x27   : > { %s5925_s2 = sld [smem:[#allocation23_spill]]  ;;  %s329_s22 = scalar_lea.vmem [#allocation3], %s4336_s23 }
  0x28   : > { %5924 = sst [smem:[#allocation20_spill]] %s5923_s27  ;;  %s336_s25 = sshll.u32 %s329_s22, 4  ;;  %s5327_s25 = int_to_ptr.vmem [resolvable:$true] %s336_s25 }
  0x29   : > { %p5323_p4 = pnand %p4848_p1, %p5281_p3  ;;  %s5329_s17 = scalar_lea.sflag [#allocation4], %s325_s24 }
  0x2b   : > { %p4995_p6 = pneg %p5323_p4 }
  0x2d   : > { %s5319_s20 = scalar_lea.hbm %s5925_s2, %s4424_s29  ;;  %s4998_s26 = scalar_lea.hbm %s5925_s2, 8192 }
  0x2e   : > { %s4993_s9 = scalar_lea.hbm %s5319_s20, 4096  ;;  %p4999_p3 = scmp.lt.u32.totalorder %s5319_s20, %s5925_s2 }
  0x2f   : > { %p4994_p5 = scmp.ne.s32.totalorder %s5319_s20, %s4993_s9  ;;  %p5000_p10 = scmp.lt.u32.totalorder %s4998_s26, %s4993_s9 }
  0x30   : > { %p5002_p13 = scmp.lt.u32.totalorder %s4993_s9, %s5319_s20 }
  0x31   : > { %p4996_p7 = pnand %p4995_p6, %p4994_p5  ;;  %p5001_p11 = por %p5000_p10, %p4999_p3 }
  0x33   : > { %p4997_p9 = pneg %p4996_p7  ;;  %p5003_p0 = por %p5002_p13, %p5001_p11 }
  0x35   : > { %p5004_p1 = pnand %p5003_p0, %p4997_p9 }
  0x37   : > { %5007 = shalt.err (!%p5004_p1)
}
  0x38   : > { %s5008_s24 = scalar_lea.vmem %s5327_s25, 4096  ;;  %s5147_s18 = smov [#allocation3]  }
  0x39   : > { %p5009_p5 = scmp.ne.s32.totalorder %s5327_s25, %s5008_s24  ;;  %s5013_s23 = sshll.u32 %s5147_s18, 4  ;;  %s5014_s23 = int_to_ptr.vmem [resolvable:$false] %s5013_s23 }
  0x3a   : > { %s5015_s29 = scalar_lea.vmem %s5014_s23, 8192  ;;  %p5016_p12 = scmp.lt.s32.totalorder %s5327_s25, %s5014_s23 }
  0x3b   : > { %p5011_p7 = pnand %p5009_p5, %p4995_p6  ;;  %p5017_p3 = scmp.lt.s32.totalorder %s5015_s29, %s5008_s24 }
  0x3d   : > { %p5012_p2 = pneg %p5011_p7  ;;  %p5018_p10 = por %p5017_p3, %p5016_p12 }
  0x3f   : > { %p5019_p11 = pnand %p5018_p10, %p5012_p2 }
  0x41   : > { %5022 = shalt.err (!%p5019_p11)
}
  0x42   : > { %s5148_s9 = smov 128   ;;  %s5149_s26 = smov 8  }
  0x43   : > { %4843 = dma.hbm_to_vmem [thread:$0]  (!%p5323_p4), %s5319_s20, 4096, %s5327_s25, %s5329_s17, %s5148_s9, %s5148_s9, %s5149_s26  }
  0x44   : > { %p4339_p6 = scmp.ge.s32.totalorder %s5145_s19, 1  ;;  %p374_p9 = scmp.lt.s32.totalorder %s5145_s19, 5 }
  0x46   : > { %p375_p13 = pnand %p4339_p6, %p374_p9 }
  0x47   : > { %s380_s22 = sand.u32 (!%p375_p13), 1, %s5121_s13  }
  0x48   : > { %378 = sbr.rel (%p375_p13) target bundleno = 5091 (0x13e3), region = 56  ;;  %s4340_s24 = sshll.u32 (!%p375_p13), %s380_s22, 8 }
  0x49   : > { %s381_s18 = scalar_lea.sflag (!%p375_p13), [#allocation4], %s380_s22  ;;  %s5360_s23 = scalar_lea.vmem (!%p375_p13), [#allocation3], %s4340_s24 }
  0x4f   : > { %5096 = dma.done.wait (%p5291_p8), %s381_s18, 4096  }
  0x50   : > { %5098 = vsyncadd (%p5291_p8), %s381_s18, 4294963200  ;;  %s5897_s17 = sand.u32 1, %s5109_s10   ;;  %p445_p12 = scmp.lt.s32.totalorder %s5133_s16, 1 }
  0x51   : > { %s5370_s25 = sshll.u32 %s5897_s17, 3  ;;  %p453_p2 = scmp.lt.s32.totalorder %s5129_s15, 1 }
  0x52   : > { %s446_s20 = scalar_select %p445_p12, %s5133_s16, 1 }
  0x53   : > { %s5375_s21 = scalar_select %p453_p2, %s5129_s15, 1 }
  0x54   : > { %s4342_s28 = sshll.u32 %s446_s20, 3  ;;  %s5927_s0 = sld [smem:[#allocation21_spill]] }
  0x55   : > { %s5928_s1 = sld [smem:[#allocation22_spill]]  ;;  %s4425_s17 = sshll.u32 %s5375_s21, 4 }
  0x56   : > { %s4426_s2 = sshll.u32 %s5375_s21, 5  ;;  %s5390_s11 = scalar_lea.vmem %s5884_s3, %s4425_s17 }
  0x57   : > { %s5395_s20 = scalar_lea.vmem %s5885_s4, %s4426_s2  ;;  %s465_s9 = scalar_lea.vmem %s5886_s5, %s5375_s21 }
  0x58   : > { %p4350_p8 = scmp.ne.s32.totalorder %s5129_s15, 0 }
  0x59   : > { %vm476_vm0 = vcmask (!%p4350_p8), 261120  }
  0x5a   : > { %s448_s26 = scalar_lea.vmem %s5927_s0, %s4342_s28  ;;  %s4427_s0 = sshll.u32 %s5375_s21, 7 }
  0x5b   : > { %s5383_s18 = scalar_lea.vmem %s5928_s1, %s4342_s28  ;;  %s5405_s24 = scalar_lea.vmem %s5887_s6, %s4427_s0  ;;  %v475_v0 = vld [vmem:[%s448_s26] sm:$0xff] (!%p4350_p8) }
  0x5c   : > { %s444_s1 = scalar_lea.vmem [#allocation6], %s5370_s25  ;;  %474 = sbr.rel (%p4350_p8) target bundleno = 99 (0x63), region = 64  ;;  %477 = vst.msk [vmem:[#allocation2] sm:$0xff] (!%p4350_p8), %vm476_vm0, %v475_v0 }
  0x63 PF: > { %v482_v1 = vld [vmem:[%s5360_s23] sm:$0xff]  ;;  %v483_v2 = vld [vmem:[%s5360_s23 + $0x8] sm:$0xff]  ;;  %v484_v3 = vld [vmem:[%s5360_s23 + $0x10] sm:$0xff]  ;;  %v5150_v4 = vmov 0.0|0.0   ;;  %vm5151_vm1 = vmmov 0   ;;  %v5152_v7 = vmov 0.0   ;;  %v501_v16 = vlaneseq }
  0x64   : > { %4752 = vmatprep.subr.bf16.mxu1 %v5150_v4  ;;  %v4753_v5 = vpack.c.bf16 %v483_v2, %v482_v1  ;;  %v485_v6 = vld [vmem:[%s5360_s23 + $0x18] sm:$0xff]  ;;  %4535 = vmatprep.mubr.msk.f32.mxu1 %vm5151_vm1, %v5152_v7  ;;  %v4351_v9 = vld [vmem:[%s5360_s23 + $0x20] sm:$0xff]  ;;  %v4352_v10 = vld [vmem:[%s5360_s23 + $0x28] sm:$0xff]  ;;  %vm505_vm2 = vcmask 261120   ;;  %s5153_s0 = smov 104   ;;  %s5154_s2 = smov 120  }
  0x65   : > { %4570 = vmatprep.subr.mxu0 %v5152_v7  ;;  %4572 = vmatprep.mubr.msk.f32.mxu0 %vm5151_vm1, %v5152_v7  ;;  %v4756_v8 = vpack.c.bf16 %v485_v6, %v484_v3  ;;  %v5422_v11 = vld [vmem:[#allocation2] sm:$0xff]  ;;  %v4759_v12 = vpack.c.bf16 %v4352_v10, %v4351_v9  ;;  %v4353_v13 = vld [vmem:[%s5360_s23 + $0x30] sm:$0xff]  ;;  %v5437_v17 = vshrl.u32 %v501_v16, 7  ;;  %s5155_s30 = smov 112   ;;  %v4355_v29 = vld [vmem:[%s5360_s23 + $0x40] sm:$0xff]  ;;  %vm1029_vm3 = vcmask 64512  }
  0x66   : > { %4754 = vmatpush3.bf16.msra.mxu1 %v4753_v5  ;;  %v4354_v14 = vld [vmem:[%s5360_s23 + $0x38] sm:$0xff]  ;;  %v4356_v30 = vld [vmem:[%s5360_s23 + $0x48] sm:$0xff]  ;;  %v4357_v31 = vld [vmem:[%s5360_s23 + $0x50] sm:$0xff]  ;;  %v5156_v35 = vmov 1983009808   ;;  %s5158_s13 = smov 16  }
  0x67   : > { %4755 = vmatprep.subr.bf16.mxu1 %v5150_v4  ;;  %v4762_v15 = vpack.c.bf16 %v4354_v14, %v4353_v13  ;;  %v581_v20 = vsub.s32 1, %v5437_v17  ;;  %v5441_v21 = vld [vmem:[%s5390_s11] sm:$0xff]  ;;  %v503_v22 = vsub.s32 0, %v5437_v17  ;;  %v4765_v32 = vpack.c.bf16 %v4356_v30, %v4355_v29  ;;  %s5159_s14 = smov 8   ;;  %s5160_s19 = smov 24  }
  0x68   : > { %v4358_v33 = vld [vmem:[%s5360_s23 + $0x58] sm:$0xff]  ;;  %v740_v36 = vunpack.c.l.s4 %v5156_v35  ;;  %v5157_v39 = vmov 1934713408   ;;  %vm2075_vm4 = vcmask 130048   ;;  %vm2077_vm5 = vcmask 195584   ;;  %p4417_p4 = scmp.ne.s32.totalorder %s5129_s15, 1 }
  0x69   : > { %v582_v23 = vrot.slane %v5441_v21, %v581_v20  ;;  %v504_v25 = vrot.slane %v5441_v21, %v503_v22  ;;  %v4768_v34 = vpack.c.bf16 %v4358_v33, %v4357_v31  ;;  %v772_v40 = vunpack.c.l.s4 %v5157_v39 }
  0x6a   : > { %4757 = vmatpush3.bf16.msra.mxu1 %v4756_v8  ;;  %v741_v41 = vunpack.c.0.s8 %v740_v36  ;;  %vm5162_vm6 = vmmov (!%p4417_p4), 0  }
  0x6b   : > { %4758 = vmatprep.subr.bf16.mxu1 %v5150_v4  ;;  %v773_v44 = vunpack.c.0.s8 %v772_v40 }
  0x6c   : > { %v5467_v45 = vsub.s32 %v741_v41, %v5437_v17 }
  0x6d   : > { %4536 = vmatmul.mubr.msk.f32.vlgmr.msra.gmra.mrb[0].mxu1 %vm505_vm2, %v5422_v11  ;;  %v5470_v52 = vsub.s32 %v773_v44, %v5437_v17 }
  0x6e   : > { %4760 = vmatpush3.bf16.msra.mxu1 %v4759_v12  ;;  %4546 = vmatprep.mubr.msk.f32.mxu1 %vm5151_vm1, %v5152_v7 }
  0x6f   : > { %4761 = vmatprep.subr.bf16.mxu1 %v5150_v4 }
  0x72   : > { %4763 = vmatpush3.bf16.msra.mxu1 %v4762_v15 }
  0x73   : > { %4764 = vmatprep.subr.bf16.mxu1 %v5150_v4 }
  0x75   : > { %4547 = vmatmul.mubr.msk.f32.vlgmr.msra.gmra.mrb[2].mxu1 %vm505_vm2, %v5422_v11 }
  0x76   : > { %4557 = vmatprep.mubr.msk.f32.mxu1 %vm5151_vm1, %v5152_v7  ;;  %4766 = vmatpush3.bf16.msra.mxu1 %v4765_v32 }
  0x77   : > { %4767 = vmatprep.subr.bf16.mxu1 %v5150_v4 }
  0x7a   : > { %4769 = vmatpush3.bf16.msra.mxu1 %v4768_v34 }
  0x7b   : > { %4560 = vmatprep.subr.mxu1 %v5152_v7 }
  0x7d   : > { %4558 = vmatmul.mubr.msk.f32.vlgmr.msra.gmra.mrb[4].mxu1 %vm505_vm2, %v5422_v11 }
  0x7e   : > { %4562 = vmatprep.mubr.msk.f32.mxu1 %vm5151_vm1, %v5152_v7 }
 0x140   : > { %v575_v18 = vpop.f32.mrb[0].mxu1 }
 0x141   : > { %v4537_v19 = vpop.f32.mrb[1].mxu1  ;;  %v576_v28 = vadd.f32 %v575_v18, %v504_v25 }
 0x148   : > { %v649_v24 = vpop.f32.mrb[2].mxu1 }
 0x149   : > { %v650_v26 = vadd.f32 %v649_v24, %v582_v23  ;;  %v4548_v27 = vpop.f32.mrb[3].mxu1 }
 0x14b   : > { %820 = vrot.lane.b32.xlu1 %v650_v26, %s5153_s0  ;;  %814 = vrot.lane.b32.xlu0 %v650_v26, %s5154_s2 }
 0x14f   : > { %728 = vrot.lane.b32.xlu1 %v576_v28, %s5154_s2  ;;  %817 = vrot.lane.b32.xlu0 %v650_v26, %s5155_s30 }
 0x150   : > { %v723_v41 = vpop.f32.mrb[4].mxu1 }
 0x153   : > { %734 = vrot.lane.b32.xlu1 %v576_v28, %s5153_s0  ;;  %731 = vrot.lane.b32.xlu0 %v576_v28, %s5155_s30 }
 0x171   : > { %901 = vxpose.xlu0.b32.start.end [1/1] (short) (narrow) %v650_v26, 8 }
 0x1bd   : > { %v821_v37 = vpop.permute.xlu1 %820  ;;  %v815_v38 = vpop.permute.xlu0 %814 }
 0x1be   : > { %933 = vxpose.xlu1.b32.start.end [1/1] (short) (narrow) %v815_v38, 8 }
 0x1c1   : > { %v729_v42 = vpop.permute.xlu1 %728  ;;  %v818_v43 = vpop.permute.xlu0 %817 }
 0x1c2   : > { %965 = vxpose.xlu0.b32.start.end [1/1] (short) (narrow) %v818_v43, 8 }
 0x1c5   : > { %v735_v46 = vpop.permute.xlu1 %734  ;;  %v732_v47 = vpop.permute.xlu0 %731 }
 0x1c6   : > { %v753_v48 = vcombine.low %v729_v42, %v735_v46  ;;  %v754_v49 = vcombine.high %v729_v42, %v735_v46  ;;  %v737_v50 = vcombine.low %v576_v28, %v732_v47  ;;  %v738_v51 = vcombine.high %v576_v28, %v732_v47  ;;  %997 = vxpose.xlu0.b32.start.end [1/1] (short) (narrow) %v821_v37, 8  ;;  %v4559_v42 = vpop.f32.mrb[5].mxu1 }
 0x1c8   : > { %v761_v53 = vrot.slane %v753_v48, %v5467_v45  ;;  %v768_v54 = vrot.slane %v754_v49, %v5467_v45  ;;  %v745_v55 = vrot.slane %v737_v50, %v5467_v45  ;;  %v752_v56 = vrot.slane %v738_v51, %v5467_v45 }
 0x1ca   : > { %v769_v57 = vcombine.low %v745_v55, %v761_v53  ;;  %v770_v58 = vcombine.high %v745_v55, %v761_v53  ;;  %v785_v59 = vcombine.low %v752_v56, %v768_v54  ;;  %v786_v60 = vcombine.high %v752_v56, %v768_v54 }
 0x1cc   : > { %v777_v61 = vrot.slane %v769_v57, %v5470_v52  ;;  %v784_v62 = vrot.slane %v770_v58, %v5470_v52  ;;  %v793_v63 = vrot.slane %v785_v59, %v5470_v52  ;;  %v800_v0 = vrot.slane %v786_v60, %v5470_v52 }
 0x1cd   : > { %v655_v60 = vsub.s32 2, %v5437_v17 }
 0x1ce   : > { %v801_v1 = vcombine.high %v777_v61, %v5152_v7  ;;  %v802_v2 = vcombine.high %v784_v62, %v5152_v7  ;;  %v803_v3 = vcombine.high %v793_v63, %v5152_v7  ;;  %v804_v5 = vcombine.high %v800_v0, %v5152_v7 }
 0x1cf   : > { %v805_v6 = vmul.f32 0.35355338, %v777_v61  ;;  %v807_v8 = vmul.f32 0.35355338, %v784_v62  ;;  %v809_v9 = vmul.f32 0.35355338, %v793_v63  ;;  %v656_v61 = vrot.slane %v5441_v21, %v655_v60 }
 0x1d0   : > { %v806_v10 = vmul.f32 0.35355338, %v801_v1  ;;  %v808_v12 = vmul.f32 0.35355338, %v802_v2  ;;  %v810_v13 = vmul.f32 0.35355338, %v803_v3 }
 0x1d1   : > { %v811_v14 = vmul.f32 0.35355338, %v800_v0  ;;  %v812_v15 = vmul.f32 0.35355338, %v804_v5  ;;  %v833_v16 = vcombine.low %v805_v6, %v807_v8  ;;  %v724_v62 = vadd.f32 %v723_v41, %v656_v61 }
 0x1d2   : > { %v841_v18 = vcombine.low %v806_v10, %v808_v12 }
 0x1d3   : > { %v849_v19 = vcombine.low %v809_v9, %v811_v14  ;;  %v857_v23 = vcombine.low %v810_v13, %v812_v15  ;;  %v840_v24 = vrot.slane %v833_v16, %v5467_v45 }
 0x1d4   : > { %v848_v25 = vrot.slane %v841_v18, %v5467_v45 }
 0x1d5   : > { %v856_v26 = vrot.slane %v849_v19, %v5467_v45  ;;  %v864_v27 = vrot.slane %v857_v23, %v5467_v45 }
 0x1d6   : > { %v865_v28 = vcombine.low %v840_v24, %v848_v25  ;;  %v866_v29 = vcombine.high %v840_v24, %v848_v25 }
 0x1d7   : > { %v881_v30 = vcombine.low %v856_v26, %v864_v27  ;;  %v882_v31 = vcombine.high %v856_v26, %v864_v27 }
 0x1d8   : > { %v873_v32 = vrot.slane %v865_v28, %v5470_v52  ;;  %v880_v33 = vrot.slane %v866_v29, %v5470_v52 }
 0x1d9   : > { %v889_v34 = vrot.slane %v881_v30, %v5470_v52  ;;  %v896_v35 = vrot.slane %v882_v31, %v5470_v52 }
 0x1db   : > { %v898_v36 = vcombine.high %v873_v32, %v889_v34  ;;  %v899_v37 = vcombine.low %v880_v33, %v896_v35  ;;  %v900_v38 = vcombine.high %v880_v33, %v896_v35  ;;  %v897_v40 = vcombine.low %v873_v32, %v889_v34 }
 0x1f1   : > { %v917_v39 = vpop.trf.xlu0 }
 0x1f2   : > { %4561 = vmatpush3.msra.mxu1 %v917_v39 }
 0x1f3   : > { %4563 = vmatmul.mubr.msk.f32.vlgmr.msra.gmra.mrb[6].mxu1 %vm1029_vm3, %v897_v40  ;;  %4565 = vmatprep.subr.mxu1 %v5152_v7 }
 0x1f4   : > { %4567 = vmatprep.mubr.msk.f32.mxu1 %vm5151_vm1, %v5152_v7 }
 0x23e   : > { %v949_v43 = vpop.trf.xlu1 }
 0x23f   : > { %4566 = vmatpush3.msra.mxu1 %v949_v43 }
 0x240   : > { %4568 = vmatmul.mubr.msk.f32.vlgmr.msra.gmra.mrb[8].mxu1 %vm1029_vm3, %v898_v36  ;;  %4575 = vmatprep.subr.mxu1 %v5152_v7 }
 0x241   : > { %4577 = vmatprep.mubr.msk.f32.mxu1 %vm5151_vm1, %v5152_v7 }
 0x242   : > { %v981_v44 = vpop.trf.xlu0 }
 0x243   : > { %4571 = vmatpush3.msra.mxu0 %v981_v44 }
 0x244   : > { %4573 = vmatmul.mubr.msk.f32.vlgmr.msra.gmra.mrb[0].mxu0 %vm1029_vm3, %v899_v37  ;;  %4580 = vmatprep.subr.mxu0 %v5152_v7 }
 0x245   : > { %4582 = vmatprep.mubr.msk.f32.mxu0 %vm5151_vm1, %v5152_v7 }
 0x246   : > { %v1013_v46 = vpop.trf.xlu0 }
 0x247   : > { %4576 = vmatpush3.msra.mxu1 %v1013_v46 }
 0x248   : > { %4578 = vmatmul.mubr.msk.f32.vlgmr.msra.gmra.mrb[10].mxu1 %vm1029_vm3, %v900_v38  ;;  %4585 = vmatprep.subr.mxu1 %v5152_v7 }
 0x249   : > { %4587 = vmatprep.mubr.msk.f32.mxu1 %vm5151_vm1, %v5152_v7 }
 0x2c6   : > { %v1099_v47 = vpop.f32.mrb[6].mxu1 }
 0x2c7   : > { %v4564_v48 = vpop.f32.mrb[7].mxu1  ;;  %v1322_v49 = vsel %vm1029_vm3, %v1099_v47, -inf }
 0x2c8   : > { %1323 = vmax.xlane.f32.xlu0 %v1322_v49 }
 0x313   : > { %v1172_v50 = vpop.f32.mrb[8].mxu1 }
 0x314   : > { %v4569_v51 = vpop.f32.mrb[9].mxu1  ;;  %v1325_v53 = vsel %vm1029_vm3, %v1172_v50, -inf }
 0x315   : > { %1326 = vmax.xlane.f32.xlu1 %v1325_v53 }
 0x317   : > { %v1245_v54 = vpop.f32.mrb[0].mxu0 }
 0x318   : > { %v4574_v55 = vpop.f32.mrb[1].mxu0  ;;  %v1328_v56 = vsel %vm1029_vm3, %v1245_v54, -inf }
 0x319   : > { %1329 = vmax.xlane.f32.xlu1 %v1328_v56  ;;  %v4359_v55 = vld [vmem:[%s5360_s23 + $0x60] sm:$0xff]  ;;  %v4360_v56 = vld [vmem:[%s5360_s23 + $0x68] sm:$0xff] }
 0x31b   : > { %v1318_v57 = vpop.f32.mrb[10].mxu1 }
 0x31c   : > { %v4579_v58 = vpop.f32.mrb[11].mxu1  ;;  %v1331_v59 = vsel %vm1029_vm3, %v1318_v57, -inf }
 0x31d   : > { %1332 = vmax.xlane.f32.xlu0 %v1331_v59 }
 0x32a   : > { %824 = vrot.lane.b32.xlu1 %v724_v62, %s5154_s2 }
 0x32e   : > { %830 = vrot.lane.b32.xlu1 %v724_v62, %s5153_s0 }
 0x333   : > { %827 = vrot.lane.b32.xlu0 %v724_v62, %s5155_s30 }
 0x355   : > { %v1324_v63 = vpop.xlane.xlu0 %1323 }
 0x356   : > { %v1334_v0 = vsub.f32 %v1099_v47, %v1324_v63 }
 0x358   : > { %v1338_v1 = vmul.f32 1.442695, %v1334_v0 }
 0x35a   : > { %4954 = vpow2.f32 %v1338_v1 }
 0x364   : > { %v4955_v2 = vpop.eup %4954 }
 0x365   : > { %v1346_v3 = vsel %vm1029_vm3, %v4955_v2, 0.0 }
 0x366   : > { %1347 = vadd.xlane.f32.xlu1 %v1346_v3 }
 0x3a2   : > { %v1327_v5 = vpop.xlane.xlu1 %1326 }
 0x3a3   : > { %v1335_v6 = vsub.f32 %v1172_v50, %v1327_v5 }
 0x3a5   : > { %v1340_v8 = vmul.f32 1.442695, %v1335_v6 }
 0x3a6   : > { %v1330_v9 = vpop.xlane.xlu1 %1329 }
 0x3a7   : > { %4956 = vpow2.f32 %v1340_v8  ;;  %v1336_v10 = vsub.f32 %v1245_v54, %v1330_v9 }
 0x3a9   : > { %v1342_v12 = vmul.f32 1.442695, %v1336_v10 }
 0x3aa   : > { %v1333_v13 = vpop.xlane.xlu0 %1332  ;;  %v825_v26 = vpop.permute.xlu1 %824 }
 0x3ab   : > { %4958 = vpow2.f32 %v1342_v12  ;;  %v1337_v14 = vsub.f32 %v1318_v57, %v1333_v13  ;;  %v4771_v57 = vpack.c.bf16 %v4360_v56, %v4359_v55 }
 0x3ad   : > { %v1344_v15 = vmul.f32 1.442695, %v1337_v14  ;;  %v4361_v14 = vld [vmem:[%s5360_s23 + $0x70] sm:$0xff] }
 0x3ae   : > { %v828_v27 = vpop.permute.xlu0 %827  ;;  %v831_v28 = vpop.permute.xlu1 %830 }
 0x3af   : > { %4960 = vpow2.f32 %v1344_v15  ;;  %v4362_v15 = vld [vmem:[%s5360_s23 + $0x78] sm:$0xff] }
 0x3b1   : > { %v4957_v16 = vpop.eup %4956 }
 0x3b2   : > { %v1349_v18 = vsel %vm1029_vm3, %v4957_v16, 0.0 }
 0x3b3   : > { %1350 = vadd.xlane.f32.xlu0 %v1349_v18 }
 0x3b5   : > { %v4959_v19 = vpop.eup %4958 }
 0x3b6   : > { %v1352_v23 = vsel %vm1029_vm3, %v4959_v19, 0.0 }
 0x3b7   : > { %1353 = vadd.xlane.f32.xlu0 %v1352_v23 }
 0x3b9   : > { %v4961_v24 = vpop.eup %4960 }
 0x3ba   : > { %v1355_v25 = vsel %vm1029_vm3, %v4961_v24, 0.0 }
 0x3bb   : > { %1356 = vadd.xlane.f32.xlu1 %v1355_v25 }
 0x3e4   : > { %1366 = vxpose.xlu0.b32.start.end [1/1] (short) (narrow) %v724_v62, 8 }
 0x3e8   : > { %1430 = vxpose.xlu0.b32.start.end [1/1] (short) (narrow) %v828_v27, 8 }
 0x3ec   : > { %1462 = vxpose.xlu0.b32.start.end [1/1] (short) (narrow) %v831_v28, 8 }
 0x3ee   : > { %1398 = vxpose.xlu1.b32.start.end [1/1] (short) (narrow) %v825_v26, 8 }
 0x3f3   : > { %v1348_v29 = vpop.xlane.xlu1 %1347 }
 0x3f4   : > { %4962 = vrcp.f32 %v1348_v29 }
 0x3fe   : > { %v4963_v30 = vpop.eup %4962 }
 0x3ff   : > { %v1362_v31 = vmul.f32 %v4963_v30, %v4955_v2 }
 0x401   : > { %4581 = vmatpush3.xpose.msk.msra.mxu0 %vm1029_vm3, %v1362_v31 }
 0x402   : > { %4590 = vmatprep.subr.mxu0 %v5152_v7 }
 0x440   : > { %v1351_v32 = vpop.xlane.xlu0 %1350 }
 0x441   : > { %4964 = vrcp.f32 %v1351_v32 }
 0x444   : > { %v1354_v35 = vpop.xlane.xlu0 %1353 }
 0x445   : > { %4966 = vrcp.f32 %v1354_v35 }
 0x448   : > { %v1357_v36 = vpop.xlane.xlu1 %1356 }
 0x449   : > { %4968 = vrcp.f32 %v1357_v36 }
 0x44b   : > { %v4965_v33 = vpop.eup %4964 }
 0x44c   : > { %v1363_v34 = vmul.f32 %v4965_v33, %v4957_v16 }
 0x44e   : > { %4586 = vmatpush3.xpose.msk.msra.mxu1 %vm1029_vm3, %v1363_v34 }
 0x44f   : > { %4595 = vmatprep.subr.mxu1 %v5152_v7  ;;  %v4967_v37 = vpop.eup %4966 }
 0x450   : > { %v1364_v38 = vmul.f32 %v4967_v37, %v4959_v19 }
 0x453   : > { %v4969_v41 = vpop.eup %4968 }
 0x454   : > { %v1365_v42 = vmul.f32 %v4969_v41, %v4961_v24  ;;  %v4774_v24 = vpack.c.bf16 %v4362_v15, %v4361_v14  ;;  %v4383_v14 = vld [vmem:[%s5360_s23 + $0x90] sm:$0xff]  ;;  %v4384_v15 = vld [vmem:[%s5360_s23 + $0x98] sm:$0xff] }
 0x464   : > { %v1382_v39 = vpop.trf.xlu0 }
 0x465   : > { %4583 = vmatmul.mubr.msk.f32.vlgmr.msra.gmra.mrb[2].mxu0 %vm1029_vm3, %v1382_v39 }
 0x466   : > { %4591 = vmatpush3.xpose.msk.msra.mxu0 %vm1029_vm3, %v1364_v38  ;;  %4592 = vmatprep.mubr.msk.f32.mxu0 %vm5151_vm1, %v5152_v7 }
 0x467   : > { %4770 = vmatprep.subr.bf16.mxu0 %v5150_v4 }
 0x468   : > { %v1446_v40 = vpop.trf.xlu0 }
 0x469   : > { %4593 = vmatmul.mubr.msk.f32.vlgmr.msra.gmra.mrb[4].mxu0 %vm1029_vm3, %v1446_v40 }
 0x46a   : > { %4608 = vmatprep.mubr.msk.f32.mxu0 %vm5151_vm1, %v5152_v7  ;;  %4772 = vmatpush3.bf16.msra.mxu0 %v4771_v57 }
 0x46b   : > { %4773 = vmatprep.subr.bf16.mxu0 %v5150_v4 }
 0x46c   : > { %v1478_v44 = vpop.trf.xlu0 }
 0x46e   : > { %v1414_v43 = vpop.trf.xlu1  ;;  %4775 = vmatpush3.bf16.msra.mxu0 %v4774_v24 }
 0x46f   : > { %4588 = vmatmul.mubr.msk.f32.vlgmr.msra.gmra.mrb[12].mxu1 %vm1029_vm3, %v1414_v43  ;;  %4782 = vmatprep.subr.bf16.mxu0 %v5150_v4 }
 0x470   : > { %4596 = vmatpush3.xpose.msk.msra.mxu1 %vm1029_vm3, %v1365_v42  ;;  %4597 = vmatprep.mubr.msk.f32.mxu1 %vm5151_vm1, %v5152_v7 }
 0x471   : > { %4776 = vmatprep.subr.bf16.mxu1 %v5150_v4 }
 0x473   : > { %4598 = vmatmul.mubr.msk.f32.vlgmr.msra.gmra.mrb[14].mxu1 %vm1029_vm3, %v1478_v44 }
 0x474   : > { %4619 = vmatprep.mubr.msk.f32.mxu1 %vm5151_vm1, %v5152_v7 }
 0x538   : > { %v1566_v46 = vpop.f32.mrb[2].mxu0 }
 0x539   : > { %v4584_v47 = vpop.f32.mrb[3].mxu0  ;;  %1798 = vxpose.xlu1.b32.start.end [1/1] (short) (narrow) %v1566_v46, 8 }
 0x53c   : > { %v1718_v48 = vpop.f32.mrb[4].mxu0 }
 0x53d   : > { %v4594_v49 = vpop.f32.mrb[5].mxu0  ;;  %1862 = vxpose.xlu1.b32.start.end [1/1] (short) (narrow) %v1718_v48, 8 }
 0x542   : > { %v1642_v50 = vpop.f32.mrb[12].mxu1 }
 0x543   : > { %1830 = vxpose.xlu0.b32.start.end [1/1] (short) (narrow) %v1642_v50, 8  ;;  %v4589_v51 = vpop.f32.mrb[13].mxu1 }
 0x546   : > { %v1794_v53 = vpop.f32.mrb[14].mxu1 }
 0x547   : > { %1894 = vxpose.xlu0.b32.start.end [1/1] (short) (narrow) %v1794_v53, 8  ;;  %v4599_v54 = vpop.f32.mrb[15].mxu1  ;;  %v2081_v53 = vsub.s32 3, %v5437_v17 }
 0x549   : > { %v2082_v54 = vrot.slane %v5441_v21, %v2081_v53 }
 0x5b9   : > { %v1814_v58 = vpop.trf.xlu1 }
 0x5bd   : > { %v1878_v59 = vpop.trf.xlu1 }
 0x5be   : > { %v1926_v62 = vcombine.low %v1814_v58, %v1878_v59  ;;  %v1927_v63 = vcombine.high %v1814_v58, %v1878_v59 }
 0x5c0   : > { %v1934_v3 = vrot.slane %v1926_v62, %v5467_v45  ;;  %v1941_v5 = vrot.slane %v1927_v63, %v5467_v45  ;;  %v4386_v62 = vld [vmem:[%s5360_s23 + $0xa8] sm:$0xff]  ;;  %v4387_v63 = vld [vmem:[%s5360_s23 + $0xb0] sm:$0xff] }
 0x5c3   : > { %v1846_v61 = vpop.trf.xlu0 }
 0x5c7   : > { %v1910_v0 = vpop.trf.xlu0 }
 0x5c8   : > { %v1942_v1 = vcombine.low %v1846_v61, %v1910_v0  ;;  %v1943_v2 = vcombine.high %v1846_v61, %v1910_v0  ;;  %v4385_v61 = vld [vmem:[%s5360_s23 + $0xa0] sm:$0xff] }
 0x5c9   : > { %v4783_v0 = vpack.c.bf16 %v4386_v62, %v4385_v61 }
 0x5ca   : > { %v1950_v6 = vrot.slane %v1942_v1, %v5467_v45  ;;  %v1957_v8 = vrot.slane %v1943_v2, %v5467_v45  ;;  %v4388_v1 = vld [vmem:[%s5360_s23 + $0xb8] sm:$0xff] }
 0x5cb   : > { %v4786_v2 = vpack.c.bf16 %v4388_v1, %v4387_v63 }
 0x5cc   : > { %v1958_v9 = vcombine.low %v1934_v3, %v1950_v6  ;;  %v1959_v10 = vcombine.high %v1934_v3, %v1950_v6  ;;  %v1974_v12 = vcombine.low %v1941_v5, %v1957_v8  ;;  %v1975_v13 = vcombine.high %v1941_v5, %v1957_v8  ;;  %v5586_v3 = vld [vmem:[%s5383_s18] sm:$0xff] }
 0x5ce   : > { %v1966_v16 = vrot.slane %v1958_v9, %v5470_v52  ;;  %v1973_v18 = vrot.slane %v1959_v10, %v5470_v52  ;;  %v1982_v19 = vrot.slane %v1974_v12, %v5470_v52  ;;  %v1989_v23 = vrot.slane %v1975_v13, %v5470_v52  ;;  %v4381_v10 = vld [vmem:[%s5360_s23 + $0x80] sm:$0xff]  ;;  %v4382_v12 = vld [vmem:[%s5360_s23 + $0x88] sm:$0xff] }
 0x5cf   : > { %v4777_v13 = vpack.c.bf16 %v4382_v12, %v4381_v10 }
 0x5d0   : > { %v1994_v25 = vcombine.low %v1966_v16, %v1973_v18  ;;  %v4378_v26 = vcombine.high %v1966_v16, %v1973_v18  ;;  %v2010_v27 = vcombine.low %v1982_v19, %v1989_v23  ;;  %v4379_v28 = vcombine.high %v1982_v19, %v1989_v23 }
 0x5d1   : > { %4778 = vmatpush3.bf16.msra.mxu1 %v4777_v13  ;;  %v4780_v16 = vpack.c.bf16 %v4384_v15, %v4383_v14  ;;  %v2280_v18 = vsub.s32 5, %v5437_v17 }
 0x5d2   : > { %v2001_v29 = vrot.slane %v1994_v25, %v5467_v45  ;;  %v2009_v30 = vrot.slane %v4378_v26, %v5467_v45  ;;  %v2017_v31 = vrot.slane %v2010_v27, %v5467_v45  ;;  %v2025_v32 = vrot.slane %v4379_v28, %v5467_v45  ;;  %4779 = vmatprep.subr.bf16.mxu1 %v5150_v4 }
 0x5d3   : > { %v2281_v19 = vrot.slane %v5441_v21, %v2280_v18 }
 0x5d4   : > { %v2027_v33 = vcombine.high %v2001_v29, %v2009_v30  ;;  %v2043_v34 = vcombine.high %v2017_v31, %v2025_v32  ;;  %v2026_v35 = vcombine.low %v2001_v29, %v2009_v30  ;;  %v2042_v36 = vcombine.low %v2017_v31, %v2025_v32  ;;  %v5608_v29 = vld [vmem:[%s5390_s11 + $0x8] sm:$0xff] }
 0x5d5   : > { %4781 = vmatpush3.bf16.msra.mxu1 %v4780_v16  ;;  %v2174_v30 = vrot.slane %v5608_v29, %v581_v20  ;;  %v2179_v32 = vrot.slane %v5608_v29, %v655_v60 }
 0x5d6   : > { %v2041_v37 = vrot.slane %v2027_v33, %v5470_v52  ;;  %v2057_v38 = vrot.slane %v2043_v34, %v5470_v52  ;;  %v2034_v39 = vrot.slane %v2026_v35, %v5470_v52  ;;  %v2050_v40 = vrot.slane %v2042_v36, %v5470_v52  ;;  %4788 = vmatprep.subr.bf16.mxu1 %v5150_v4 }
 0x5d7   : > { %v2203_v36 = vsub.s32 4, %v5437_v17 }
 0x5d8   : > { %v2060_v41 = vcombine.low %v2041_v37, %v2057_v38  ;;  %v2059_v42 = vcombine.high %v2034_v39, %v2050_v40  ;;  %v2058_v43 = vcombine.low %v2034_v39, %v2050_v40  ;;  %v2061_v44 = vcombine.high %v2041_v37, %v2057_v38 }
 0x5d9   : > { %v2204_v20 = vrot.slane %v5441_v21, %v2203_v36 }
 0x5da   : > { %2067 = vrot.lane.b32.xlu0 %v2060_v41, %s5158_s13  ;;  %2063 = vrot.lane.b32.xlu1 %v2059_v42, %s5159_s14  ;;  %v4389_v42 = vld [vmem:[%s5360_s23 + $0xc0] sm:$0xff] }
 0x5de   : > { %2071 = vrot.lane.b32.xlu1 %v2061_v44, %s5160_s19 }
 0x64c   : > { %v2064_v46 = vpop.permute.xlu1 %2063  ;;  %v2068_v47 = vpop.permute.xlu0 %2067 }
 0x64d   : > { %v2074_v48 = vsel %vm1029_vm3, %v2058_v43, %v2064_v46  ;;  %v4390_v43 = vld [vmem:[%s5360_s23 + $0xc8] sm:$0xff]  ;;  %v4391_v46 = vld [vmem:[%s5360_s23 + $0xd0] sm:$0xff] }
 0x64e   : > { %v2076_v50 = vsel %vm2075_vm4, %v2074_v48, %v2068_v47  ;;  %v4789_v44 = vpack.c.bf16 %v4390_v43, %v4389_v42  ;;  %v4392_v47 = vld [vmem:[%s5360_s23 + $0xd8] sm:$0xff] }
 0x64f   : > { %v4792_v48 = vpack.c.bf16 %v4392_v47, %v4391_v46 }
 0x650   : > { %v2072_v49 = vpop.permute.xlu1 %2071 }
 0x651   : > { %v2078_v51 = vsel %vm2077_vm5, %v2076_v50, %v2072_v49 }
 0x652   : > { %4609 = vmatmul.mubr.msk.f32.vlgmr.msra.gmra.mrb[6].mxu0 %vm505_vm2, %v2078_v51 }
 0x653   : > { %4630 = vmatprep.mubr.msk.f32.mxu0 %vm5151_vm1, %v5152_v7  ;;  %4784 = vmatpush3.bf16.msra.mxu0 %v4783_v0 }
 0x654   : > { %4785 = vmatprep.subr.bf16.mxu0 %v5150_v4 }
 0x657   : > { %4787 = vmatpush3.bf16.msra.mxu0 %v4786_v2 }
 0x658   : > { %4644 = vmatprep.subr.mxu0 %v5152_v7 }
 0x65a   : > { %4631 = vmatmul.mubr.msk.f32.vlgmr.msra.gmra.mrb[8].mxu0 %vm505_vm2, %v5586_v3 }
 0x65b   : > { %4646 = vmatprep.mubr.msk.f32.mxu0 %vm5151_vm1, %v5152_v7 }
 0x725   : > { %v2152_v55 = vpop.f32.mrb[6].mxu0 }
 0x726   : > { %v2153_v56 = vadd.f32 %v2152_v55, %v2082_v54  ;;  %v4610_v57 = vpop.f32.mrb[7].mxu0 }
 0x728   : > { %v2156_v58 = vadd.f32 %v2153_v56, %v5422_v11 }
 0x72a   : > { %v2157_v59 = vsel %vm505_vm2, %v2156_v58, 0.0 }
 0x72b   : > { %2158 = vadd.xlane.f32.xlu1 %v2157_v59 }
 0x72d   : > { %v2351_v23 = vpop.f32.mrb[8].mxu0 }
 0x72e   : > { %v2352_v24 = vadd.f32 %v2351_v23, %v2281_v19  ;;  %v4632_v25 = vpop.f32.mrb[9].mxu0 }
 0x73c   : > { %2516 = vrot.lane.b32.xlu1 %v2352_v24, %s5154_s2 }
 0x740   : > { %2522 = vrot.lane.b32.xlu1 %v2352_v24, %s5153_s0 }
 0x7b8   : > { %v2159_v11 = vpop.xlane.xlu1 %2158 }
 0x7b9   : > { %v2161_v5 = vmul.f32 0.03125, %v2159_v11 }
 0x7bb   : > { %v2162_v6 = vsub.f32 %v2156_v58, %v2161_v5 }
 0x7bc   : > { %v2517_v39 = vpop.permute.xlu1 %2516 }
 0x7bd   : > { %v2163_v8 = vmul.f32 %v2162_v6, %v2162_v6 }
 0x7bf   : > { %v2164_v9 = vsel %vm505_vm2, %v2163_v8, 0.0 }
 0x7c0   : > { %2165 = vadd.xlane.f32.xlu0 %v2164_v9  ;;  %v2523_v41 = vpop.permute.xlu1 %2522 }
 0x7d6   : > { %2519 = vrot.lane.b32.xlu0 %v2352_v24, %s5155_s30 }
 0x84d   : > { %v2166_v26 = vpop.xlane.xlu0 %2165 }
 0x84e   : > { %v2167_v27 = vmul.f32 0.03125, %v2166_v26 }
 0x850   : > { %v2168_v28 = vadd.f32 1e-05, %v2167_v27 }
 0x851   : > { %v2520_v40 = vpop.permute.xlu0 %2519 }
 0x852   : > { %4970 = vrsqrt.f32 %v2168_v28 }
 0x85c   : > { %v4971_v31 = vpop.eup %4970 }
 0x85d   : > { %v2170_v33 = vmul.f32 %v4971_v31, %v2162_v6 }
 0x85f   : > { %v2175_v34 = vmul.f32 %v2174_v30, %v2170_v33 }
 0x861   : > { %v5616_v35 = vadd.f32 %v2179_v32, %v2175_v34 }
 0x863   : > { %4620 = vmatmul.mubr.msk.f32.vlgmr.msra.gmra.mrb[16].mxu1 %vm505_vm2, %v5616_v35 }
 0x864   : > { %4641 = vmatprep.mubr.msk.f32.mxu1 %vm5151_vm1, %v5152_v7  ;;  %4790 = vmatpush3.bf16.msra.mxu1 %v4789_v44 }
 0x865   : > { %4791 = vmatprep.subr.bf16.mxu1 %v5150_v4 }
 0x868   : > { %4793 = vmatpush3.bf16.msra.mxu1 %v4792_v48 }
 0x869   : > { %4649 = vmatprep.subr.mxu1 %v5152_v7 }
 0x86b   : > { %4642 = vmatmul.mubr.msk.f32.vlgmr.msra.gmra.mrb[18].mxu1 %vm505_vm2, %v5586_v3 }
 0x86c   : > { %4651 = vmatprep.mubr.msk.f32.mxu1 %vm5151_vm1, %v5152_v7 }
 0x936   : > { %v2274_v60 = vpop.f32.mrb[16].mxu1 }
 0x937   : > { %v2275_v37 = vadd.f32 %v2274_v60, %v2204_v20  ;;  %v4621_v38 = vpop.f32.mrb[17].mxu1 }
 0x939   : > { %2433 = vrot.lane.b32.xlu0 %v2275_v37, %s5155_s30  ;;  %2430 = vrot.lane.b32.xlu1 %v2275_v37, %s5154_s2 }
 0x93d   : > { %2436 = vrot.lane.b32.xlu1 %v2275_v37, %s5153_s0 }
 0x957   : > { %2603 = vxpose.xlu0.b32.start.end [1/1] (short) (narrow) %v2352_v24, 8 }
 0x95b   : > { %2667 = vxpose.xlu0.b32.start.end [1/1] (short) (narrow) %v2520_v40, 8 }
 0x95f   : > { %2699 = vxpose.xlu0.b32.start.end [1/1] (short) (narrow) %v2523_v41, 8 }
 0x966   : > { %2635 = vxpose.xlu1.b32.start.end [1/1] (short) (narrow) %v2517_v39, 8 }
 0x9ab   : > { %v2431_v49 = vpop.permute.xlu1 %2430  ;;  %v2434_v50 = vpop.permute.xlu0 %2433 }
 0x9ac   : > { %v2439_v54 = vcombine.low %v2275_v37, %v2434_v50  ;;  %v2440_v57 = vcombine.high %v2275_v37, %v2434_v50 }
 0x9ae   : > { %v2447_v61 = vrot.slane %v2439_v54, %v5467_v45  ;;  %v2454_v62 = vrot.slane %v2440_v57, %v5467_v45  ;;  %v2425_v54 = vpop.f32.mrb[18].mxu1 }
 0x9af   : > { %v2437_v51 = vpop.permute.xlu1 %2436 }
 0x9b0   : > { %v2455_v55 = vcombine.low %v2431_v49, %v2437_v51  ;;  %v2456_v56 = vcombine.high %v2431_v49, %v2437_v51 }
 0x9b2   : > { %v2463_v58 = vrot.slane %v2455_v55, %v5467_v45  ;;  %v2470_v59 = vrot.slane %v2456_v56, %v5467_v45  ;;  %v4643_v55 = vpop.f32.mrb[19].mxu1 }
 0x9b4   : > { %v2471_v63 = vcombine.low %v2447_v61, %v2463_v58  ;;  %v2472_v0 = vcombine.high %v2447_v61, %v2463_v58  ;;  %v2487_v1 = vcombine.low %v2454_v62, %v2470_v59  ;;  %v2488_v2 = vcombine.high %v2454_v62, %v2470_v59 }
 0x9b6   : > { %v2479_v3 = vrot.slane %v2471_v63, %v5470_v52  ;;  %v2486_v11 = vrot.slane %v2472_v0, %v5470_v52  ;;  %v2495_v5 = vrot.slane %v2487_v1, %v5470_v52  ;;  %v2502_v6 = vrot.slane %v2488_v2, %v5470_v52 }
 0x9b8   : > { %v2503_v8 = vcombine.high %v2479_v3, %v5152_v7  ;;  %v2504_v9 = vcombine.high %v2486_v11, %v5152_v7  ;;  %v2505_v10 = vcombine.high %v2495_v5, %v5152_v7  ;;  %v2506_v12 = vcombine.high %v2502_v6, %v5152_v7 }
 0x9b9   : > { %v2507_v19 = vmul.f32 0.35355338, %v2479_v3  ;;  %v2509_v23 = vmul.f32 0.35355338, %v2486_v11  ;;  %v2511_v24 = vmul.f32 0.35355338, %v2495_v5 }
 0x9ba   : > { %v2508_v13 = vmul.f32 0.35355338, %v2503_v8  ;;  %v2510_v14 = vmul.f32 0.35355338, %v2504_v9  ;;  %v2512_v15 = vmul.f32 0.35355338, %v2505_v10 }
 0x9bb   : > { %v2514_v16 = vmul.f32 0.35355338, %v2506_v12  ;;  %v2513_v25 = vmul.f32 0.35355338, %v2502_v6  ;;  %v2535_v28 = vcombine.low %v2507_v19, %v2509_v23  ;;  %v2357_v5 = vsub.s32 6, %v5437_v17 }
 0x9bc   : > { %v2543_v26 = vcombine.low %v2508_v13, %v2510_v14 }
 0x9bd   : > { %v2559_v27 = vcombine.low %v2512_v15, %v2514_v16  ;;  %v2551_v30 = vcombine.low %v2511_v24, %v2513_v25  ;;  %v2542_v33 = vrot.slane %v2535_v28, %v5467_v45  ;;  %v2358_v6 = vrot.slane %v5441_v21, %v2357_v5 }
 0x9be   : > { %v2550_v31 = vrot.slane %v2543_v26, %v5467_v45 }
 0x9bf   : > { %v2566_v32 = vrot.slane %v2559_v27, %v5467_v45  ;;  %v2558_v34 = vrot.slane %v2551_v30, %v5467_v45  ;;  %v2426_v8 = vadd.f32 %v2425_v54, %v2358_v6 }
 0x9c0   : > { %v2567_v20 = vcombine.low %v2542_v33, %v2550_v31  ;;  %v2568_v37 = vcombine.high %v2542_v33, %v2550_v31 }
 0x9c1   : > { %v2583_v60 = vcombine.low %v2558_v34, %v2566_v32  ;;  %v2584_v38 = vcombine.high %v2558_v34, %v2566_v32 }
 0x9c2   : > { %v2575_v39 = vrot.slane %v2567_v20, %v5470_v52  ;;  %v2582_v43 = vrot.slane %v2568_v37, %v5470_v52 }
 0x9c3   : > { %v2591_v40 = vrot.slane %v2583_v60, %v5470_v52  ;;  %v2598_v44 = vrot.slane %v2584_v38, %v5470_v52 }
 0x9c5   : > { %v2599_v42 = vcombine.low %v2575_v39, %v2591_v40  ;;  %v2601_v47 = vcombine.low %v2582_v43, %v2598_v44  ;;  %v2600_v49 = vcombine.high %v2575_v39, %v2591_v40  ;;  %v2602_v51 = vcombine.high %v2582_v43, %v2598_v44 }
 0x9d7   : > { %v2619_v41 = vpop.trf.xlu0 }
 0x9d8   : > { %4645 = vmatpush3.msra.mxu0 %v2619_v41 }
 0x9d9   : > { %4647 = vmatmul.mubr.msk.f32.vlgmr.msra.gmra.mrb[10].mxu0 %vm1029_vm3, %v2599_v42  ;;  %4654 = vmatprep.subr.mxu0 %v5152_v7 }
 0x9da   : > { %4656 = vmatprep.mubr.msk.f32.mxu0 %vm5151_vm1, %v5152_v7 }
 0x9db   : > { %v2683_v46 = vpop.trf.xlu0 }
 0x9dc   : > { %4655 = vmatpush3.msra.mxu0 %v2683_v46 }
 0x9dd   : > { %4657 = vmatmul.mubr.msk.f32.vlgmr.msra.gmra.mrb[12].mxu0 %vm1029_vm3, %v2601_v47  ;;  %4664 = vmatprep.subr.mxu0 %v5152_v7 }
 0x9de   : > { %4666 = vmatprep.mubr.msk.f32.mxu0 %vm5151_vm1, %v5152_v7 }
 0x9df   : > { %v2715_v50 = vpop.trf.xlu0 }
 0x9e6   : > { %v2651_v48 = vpop.trf.xlu1 }
 0x9e7   : > { %4650 = vmatpush3.msra.mxu1 %v2651_v48 }
 0x9e8   : > { %4652 = vmatmul.mubr.msk.f32.vlgmr.msra.gmra.mrb[20].mxu1 %vm1029_vm3, %v2600_v49  ;;  %4659 = vmatprep.subr.mxu1 %v5152_v7 }
 0x9e9   : > { %4660 = vmatpush3.msra.mxu1 %v2715_v50  ;;  %4661 = vmatprep.mubr.msk.f32.mxu1 %vm5151_vm1, %v5152_v7 }
 0x9ea   : > { %4669 = vmatprep.subr.mxu1 %v5152_v7 }
 0x9ec   : > { %4662 = vmatmul.mubr.msk.f32.vlgmr.msra.gmra.mrb[22].mxu1 %vm1029_vm3, %v2602_v51 }
 0x9ed   : > { %4671 = vmatprep.mubr.msk.f32.mxu1 %vm5151_vm1, %v5152_v7 }
 0xaac   : > { %v2800_v56 = vpop.f32.mrb[10].mxu0 }
 0xaad   : > { %v4648_v57 = vpop.f32.mrb[11].mxu0  ;;  %v3023_v58 = vsel %vm1029_vm3, %v2800_v56, -inf }
 0xaae   : > { %3024 = vmax.xlane.f32.xlu0 %v3023_v58 }
 0xab0   : > { %v2946_v59 = vpop.f32.mrb[12].mxu0 }
 0xab1   : > { %v4658_v61 = vpop.f32.mrb[13].mxu0  ;;  %v3029_v3 = vsel %vm1029_vm3, %v2946_v59, -inf }
 0xabb   : > { %v2873_v62 = vpop.f32.mrb[20].mxu1 }
 0xabc   : > { %v4653_v63 = vpop.f32.mrb[21].mxu1  ;;  %v3026_v0 = vsel %vm1029_vm3, %v2873_v62, -inf }
 0xabd   : > { %3027 = vmax.xlane.f32.xlu1 %v3026_v0 }
 0xabf   : > { %v3019_v1 = vpop.f32.mrb[22].mxu1 }
 0xac0   : > { %v4663_v2 = vpop.f32.mrb[23].mxu1  ;;  %v3032_v11 = vsel %vm1029_vm3, %v3019_v1, -inf }
 0xac1   : > { %3030 = vmax.xlane.f32.xlu1 %v3029_v3  ;;  %3033 = vmax.xlane.f32.xlu0 %v3032_v11  ;;  %v4393_v2 = vld [vmem:[%s5360_s23 + $0xe0] sm:$0xff]  ;;  %v4394_v3 = vld [vmem:[%s5360_s23 + $0xe8] sm:$0xff] }
 0xac2   : > { %v4795_v11 = vpack.c.bf16 %v4394_v3, %v4393_v2 }
 0xad2   : > { %2526 = vrot.lane.b32.xlu1 %v2426_v8, %s5154_s2 }
 0xad6   : > { %2532 = vrot.lane.b32.xlu1 %v2426_v8, %s5153_s0 }
 0xad7   : > { %2529 = vrot.lane.b32.xlu0 %v2426_v8, %s5155_s30 }
 0xb3b   : > { %v3025_v9 = vpop.xlane.xlu0 %3024 }
 0xb3c   : > { %v3035_v10 = vsub.f32 %v2800_v56, %v3025_v9 }
 0xb3e   : > { %v3039_v12 = vmul.f32 1.442695, %v3035_v10 }
 0xb40   : > { %4972 = vpow2.f32 %v3039_v12 }
 0xb4a   : > { %v4973_v13 = vpop.eup %4972  ;;  %v3028_v14 = vpop.xlane.xlu1 %3027 }
 0xb4b   : > { %v3036_v15 = vsub.f32 %v2873_v62, %v3028_v14  ;;  %v3047_v16 = vsel %vm1029_vm3, %v4973_v13, 0.0 }
 0xb4c   : > { %3048 = vadd.xlane.f32.xlu1 %v3047_v16 }
 0xb4d   : > { %v3041_v19 = vmul.f32 1.442695, %v3036_v15 }
 0xb4e   : > { %v3031_v23 = vpop.xlane.xlu1 %3030  ;;  %v3034_v21 = vpop.xlane.xlu0 %3033 }
 0xb4f   : > { %4974 = vpow2.f32 %v3041_v19  ;;  %v3037_v24 = vsub.f32 %v2946_v59, %v3031_v23  ;;  %v3038_v25 = vsub.f32 %v3019_v1, %v3034_v21 }
 0xb51   : > { %v3043_v26 = vmul.f32 1.442695, %v3037_v24  ;;  %v3045_v27 = vmul.f32 1.442695, %v3038_v25 }
 0xb52   : > { %v2527_v20 = vpop.permute.xlu1 %2526  ;;  %v2530_v60 = vpop.permute.xlu0 %2529 }
 0xb53   : > { %4976 = vpow2.f32 %v3043_v26 }
 0xb54   : > { %4978 = vpow2.f32 %v3045_v27 }
 0xb56   : > { %v2533_v37 = vpop.permute.xlu1 %2532 }
 0xb59   : > { %v4975_v28 = vpop.eup %4974 }
 0xb5a   : > { %v3050_v30 = vsel %vm1029_vm3, %v4975_v28, 0.0 }
 0xb5b   : > { %3051 = vadd.xlane.f32.xlu0 %v3050_v30  ;;  %v4396_v30 = vld [vmem:[%s5360_s23 + $0xf8] sm:$0xff] }
 0xb5d   : > { %v4977_v31 = vpop.eup %4976 }
 0xb5e   : > { %v4979_v32 = vpop.eup %4978  ;;  %v3053_v33 = vsel %vm1029_vm3, %v4977_v31, 0.0 }
 0xb5f   : > { %3054 = vadd.xlane.f32.xlu0 %v3053_v33  ;;  %v3056_v34 = vsel %vm1029_vm3, %v4979_v32, 0.0 }
 0xb60   : > { %3057 = vadd.xlane.f32.xlu1 %v3056_v34 }
 0xb8c   : > { %3067 = vxpose.xlu0.b32.start.end [1/1] (short) (narrow) %v2426_v8, 8 }
 0xb90   : > { %3131 = vxpose.xlu0.b32.start.end [1/1] (short) (narrow) %v2530_v60, 8 }
 0xb93   : > { %3099 = vxpose.xlu1.b32.start.end [1/1] (short) (narrow) %v2527_v20, 8 }
 0xb94   : > { %3163 = vxpose.xlu0.b32.start.end [1/1] (short) (narrow) %v2533_v37, 8 }
 0xbd9   : > { %v3049_v38 = vpop.xlane.xlu1 %3048 }
 0xbda   : > { %4980 = vrcp.f32 %v3049_v38 }
 0xbe4   : > { %v4981_v39 = vpop.eup %4980 }
 0xbe5   : > { %v3063_v40 = vmul.f32 %v4981_v39, %v4973_v13 }
 0xbe7   : > { %4665 = vmatpush3.xpose.msk.msra.mxu0 %vm1029_vm3, %v3063_v40 }
 0xbe8   : > { %v3052_v41 = vpop.xlane.xlu0 %3051  ;;  %4674 = vmatprep.subr.mxu0 %v5152_v7 }
 0xbe9   : > { %4982 = vrcp.f32 %v3052_v41 }
 0xbec   : > { %v3055_v44 = vpop.xlane.xlu0 %3054 }
 0xbed   : > { %4984 = vrcp.f32 %v3055_v44  ;;  %v3058_v46 = vpop.xlane.xlu1 %3057 }
 0xbee   : > { %4986 = vrcp.f32 %v3058_v46 }
 0xbf3   : > { %v4983_v42 = vpop.eup %4982 }
 0xbf4   : > { %v3064_v43 = vmul.f32 %v4983_v42, %v4975_v28  ;;  %v4395_v28 = vld [vmem:[%s5360_s23 + $0xf0] sm:$0xff] }
 0xbf5   : > { %v4798_v20 = vpack.c.bf16 %v4396_v30, %v4395_v28  ;;  %v3967_v28 = vld [vmem:[%s5405_s24 + $0x18] sm:$0xff] }
 0xbf6   : > { %4670 = vmatpush3.xpose.msk.msra.mxu1 %vm1029_vm3, %v3064_v43 }
 0xbf7   : > { %4679 = vmatprep.subr.mxu1 %v5152_v7  ;;  %v4985_v47 = vpop.eup %4984 }
 0xbf8   : > { %v3065_v48 = vmul.f32 %v4985_v47, %v4977_v31  ;;  %v4987_v50 = vpop.eup %4986 }
 0xbf9   : > { %v3066_v54 = vmul.f32 %v4987_v50, %v4979_v32 }
 0xc0c   : > { %v3083_v49 = vpop.trf.xlu0 }
 0xc0d   : > { %4667 = vmatmul.mubr.msk.f32.vlgmr.msra.gmra.mrb[14].mxu0 %vm1029_vm3, %v3083_v49 }
 0xc0e   : > { %4675 = vmatpush3.xpose.msk.msra.mxu0 %vm1029_vm3, %v3065_v48  ;;  %4676 = vmatprep.mubr.msk.f32.mxu0 %vm5151_vm1, %v5152_v7 }
 0xc0f   : > { %4794 = vmatprep.subr.bf16.mxu0 %v5150_v4 }
 0xc10   : > { %v3147_v51 = vpop.trf.xlu0 }
 0xc11   : > { %4677 = vmatmul.mubr.msk.f32.vlgmr.msra.gmra.mrb[16].mxu0 %vm1029_vm3, %v3147_v51 }
 0xc12   : > { %4692 = vmatprep.mubr.msk.f32.mxu0 %vm5151_vm1, %v5152_v7  ;;  %4796 = vmatpush3.bf16.msra.mxu0 %v4795_v11 }
 0xc13   : > { %v3115_v55 = vpop.trf.xlu1  ;;  %4797 = vmatprep.subr.bf16.mxu0 %v5150_v4 }
 0xc14   : > { %4672 = vmatmul.mubr.msk.f32.vlgmr.msra.gmra.mrb[24].mxu1 %vm1029_vm3, %v3115_v55  ;;  %v3179_v56 = vpop.trf.xlu0 }
 0xc15   : > { %4680 = vmatpush3.xpose.msk.msra.mxu1 %vm1029_vm3, %v3066_v54  ;;  %4681 = vmatprep.mubr.msk.f32.mxu1 %vm5151_vm1, %v5152_v7 }
 0xc16   : > { %4800 = vmatprep.subr.bf16.mxu1 %v5150_v4  ;;  %4799 = vmatpush3.bf16.msra.mxu0 %v4798_v20  ;;  %v3971_v20 = vld [vmem:[%s5405_s24 + $0x38] sm:$0xff] }
 0xc17   : > { %4806 = vmatprep.subr.bf16.mxu0 %v5150_v4 }
 0xc18   : > { %4682 = vmatmul.mubr.msk.f32.vlgmr.msra.gmra.mrb[26].mxu1 %vm1029_vm3, %v3179_v56 }
 0xc19   : > { %4703 = vmatprep.mubr.msk.f32.mxu1 %vm5151_vm1, %v5152_v7 }
 0xce0   : > { %v3267_v57 = vpop.f32.mrb[14].mxu0 }
 0xce1   : > { %v4668_v58 = vpop.f32.mrb[15].mxu0  ;;  %3499 = vxpose.xlu1.b32.start.end [1/1] (short) (narrow) %v3267_v57, 8 }
 0xce4   : > { %v3419_v59 = vpop.f32.mrb[16].mxu0 }
 0xce5   : > { %v4678_v61 = vpop.f32.mrb[17].mxu0  ;;  %3563 = vxpose.xlu1.b32.start.end [1/1] (short) (narrow) %v3419_v59, 8 }
 0xce7   : > { %v3343_v62 = vpop.f32.mrb[24].mxu1 }
 0xce8   : > { %3531 = vxpose.xlu0.b32.start.end [1/1] (short) (narrow) %v3343_v62, 8  ;;  %v4673_v63 = vpop.f32.mrb[25].mxu1 }
 0xceb   : > { %v3495_v0 = vpop.f32.mrb[26].mxu1 }
 0xcec   : > { %3595 = vxpose.xlu0.b32.start.end [1/1] (short) (narrow) %v3495_v0, 8  ;;  %v4683_v1 = vpop.f32.mrb[27].mxu1  ;;  %v3780_v0 = vsub.s32 7, %v5437_v17  ;;  %v4085_v17 = vld [vmem:[%s5888_s7 + $0x10] sm:$0xff] (!%p4417_p4) }
 0xced   : > { %v4992_v1 = vld [vmem:[%s5390_s11] sm:$0xff] }
 0xcee   : > { %v3781_v2 = vrot.slane %v4992_v1, %v3780_v0 }
 0xd61   : > { %v3515_v6 = vpop.trf.xlu1 }
 0xd65   : > { %v3579_v9 = vpop.trf.xlu1 }
 0xd66   : > { %v3627_v10 = vcombine.low %v3515_v6, %v3579_v9  ;;  %v3628_v12 = vcombine.high %v3515_v6, %v3579_v9 }
 0xd68   : > { %v3547_v8 = vpop.trf.xlu0  ;;  %v3635_v16 = vrot.slane %v3627_v10, %v5467_v45  ;;  %v3642_v19 = vrot.slane %v3628_v12, %v5467_v45 }
 0xd6c   : > { %v3611_v13 = vpop.trf.xlu0 }
 0xd6d   : > { %v3643_v14 = vcombine.low %v3547_v8, %v3611_v13  ;;  %v3644_v15 = vcombine.high %v3547_v8, %v3611_v13 }
 0xd6f   : > { %v3651_v23 = vrot.slane %v3643_v14, %v5467_v45  ;;  %v3658_v21 = vrot.slane %v3644_v15, %v5467_v45  ;;  %v3879_v15 = vld [vmem:[%s5395_s20] sm:$0xff] }
 0xd71   : > { %v3659_v24 = vcombine.low %v3635_v16, %v3651_v23  ;;  %v3660_v25 = vcombine.high %v3635_v16, %v3651_v23  ;;  %v3675_v26 = vcombine.low %v3642_v19, %v3658_v21  ;;  %v3676_v27 = vcombine.high %v3642_v19, %v3658_v21  ;;  %v3880_v16 = vld [vmem:[%s5395_s20 + $0x8] sm:$0xff]  ;;  %v3882_v23 = vld [vmem:[%s5395_s20 + $0x18] sm:$0xff] }
 0xd72   : > { %v4801_v19 = vpack.c.bf16 %v3880_v16, %v3879_v15  ;;  %v4076_v15 = vrot.slane %v5608_v29, %v2357_v5 }
 0xd73   : > { %v3667_v31 = vrot.slane %v3659_v24, %v5470_v52  ;;  %v3674_v32 = vrot.slane %v3660_v25, %v5470_v52  ;;  %v3683_v33 = vrot.slane %v3675_v26, %v5470_v52  ;;  %v3690_v34 = vrot.slane %v3676_v27, %v5470_v52  ;;  %v3964_v24 = vld [vmem:[%s5405_s24] sm:$0xff]  ;;  %v3965_v25 = vld [vmem:[%s5405_s24 + $0x8] sm:$0xff]  ;;  %v3966_v26 = vld [vmem:[%s5405_s24 + $0x10] sm:$0xff] }
 0xd74   : > { %4802 = vmatpush3.bf16.msra.mxu1 %v4801_v19  ;;  %v4807_v27 = vpack.c.bf16 %v3965_v25, %v3964_v24  ;;  %v4810_v30 = vpack.c.bf16 %v3967_v28, %v3966_v26  ;;  %v5163_v24 = vmov (!%p4417_p4), 0.0   ;;  %v4418_v26 = vld [vmem:[%s5889_s8] ss:$0 sm:$0xff] (!%p4417_p4) }
 0xd75   : > { %v3695_v60 = vcombine.low %v3667_v31, %v3674_v32  ;;  %v4412_v37 = vcombine.high %v3667_v31, %v3674_v32  ;;  %v3711_v38 = vcombine.low %v3683_v33, %v3690_v34  ;;  %v4413_v39 = vcombine.high %v3683_v33, %v3690_v34  ;;  %4803 = vmatprep.subr.bf16.mxu1 %v5150_v4  ;;  %v3968_v31 = vld [vmem:[%s5405_s24 + $0x20] sm:$0xff]  ;;  %v3969_v32 = vld [vmem:[%s5405_s24 + $0x28] sm:$0xff]  ;;  %v3970_v34 = vld [vmem:[%s5405_s24 + $0x30] sm:$0xff] }
 0xd76   : > { %v4813_v33 = vpack.c.bf16 %v3969_v32, %v3968_v31 }
 0xd77   : > { %v3702_v40 = vrot.slane %v3695_v60, %v5467_v45  ;;  %v3710_v41 = vrot.slane %v4412_v37, %v5467_v45  ;;  %v3718_v42 = vrot.slane %v3711_v38, %v5467_v45  ;;  %v3726_v43 = vrot.slane %v4413_v39, %v5467_v45  ;;  %v3972_v37 = vld [vmem:[%s5405_s24 + $0x40] sm:$0xff]  ;;  %v3973_v38 = vld [vmem:[%s5405_s24 + $0x48] sm:$0xff] }
 0xd78   : > { %v4816_v60 = vpack.c.bf16 %v3971_v20, %v3970_v34  ;;  %v4819_v39 = vpack.c.bf16 %v3973_v38, %v3972_v37 }
 0xd79   : > { %v3728_v44 = vcombine.high %v3702_v40, %v3710_v41  ;;  %v3744_v46 = vcombine.high %v3718_v42, %v3726_v43  ;;  %v3727_v47 = vcombine.low %v3702_v40, %v3710_v41  ;;  %v3743_v48 = vcombine.low %v3718_v42, %v3726_v43  ;;  %v3974_v40 = vld [vmem:[%s5405_s24 + $0x50] sm:$0xff]  ;;  %v3975_v41 = vld [vmem:[%s5405_s24 + $0x58] sm:$0xff]  ;;  %v3976_v43 = vld [vmem:[%s5405_s24 + $0x60] sm:$0xff] }
 0xd7a   : > { %v4822_v42 = vpack.c.bf16 %v3975_v41, %v3974_v40 }
 0xd7b   : > { %v3742_v49 = vrot.slane %v3728_v44, %v5470_v52  ;;  %v3758_v50 = vrot.slane %v3744_v46, %v5470_v52  ;;  %v3735_v51 = vrot.slane %v3727_v47, %v5470_v52  ;;  %v3751_v54 = vrot.slane %v3743_v48, %v5470_v52  ;;  %v3977_v44 = vld [vmem:[%s5405_s24 + $0x68] sm:$0xff] }
 0xd7c   : > { %v4825_v46 = vpack.c.bf16 %v3977_v44, %v3976_v43 }
 0xd7d   : > { %v3761_v55 = vcombine.low %v3742_v49, %v3758_v50  ;;  %v3760_v56 = vcombine.high %v3735_v51, %v3751_v54  ;;  %v3759_v57 = vcombine.low %v3735_v51, %v3751_v54  ;;  %v3762_v45 = vcombine.high %v3742_v49, %v3758_v50 }
 0xd7e   : > { %v3872_v50 = vrot.slane %v5608_v29, %v2081_v53  ;;  %v3877_v54 = vrot.slane %v5608_v29, %v2203_v36  ;;  %v3983_v36 = vrot.slane %v5608_v29, %v503_v22  ;;  %v4071_v22 = vrot.slane %v5608_v29, %v2280_v18  ;;  %v4084_v18 = vld [vmem:[%s5888_s7 + $0x8] sm:$0xff] (!%p4417_p4) }
 0xd7f   : > { %3768 = vrot.lane.b32.xlu0 %v3761_v55, %s5158_s13  ;;  %3764 = vrot.lane.b32.xlu1 %v3760_v56, %s5159_s14  ;;  %v5161_v29 = vmov (!%p4417_p4), 0.0|0.0  }
 0xd83   : > { %3772 = vrot.lane.b32.xlu1 %v3762_v45, %s5160_s19  ;;  %v3979_v45 = vld [vmem:[%s5405_s24 + $0x78] sm:$0xff] }
 0xdf1   : > { %v3765_v58 = vpop.permute.xlu1 %3764  ;;  %v3769_v59 = vpop.permute.xlu0 %3768 }
 0xdf2   : > { %v3775_v61 = vsel %vm1029_vm3, %v3759_v57, %v3765_v58 }
 0xdf3   : > { %v3776_v63 = vsel %vm2075_vm4, %v3775_v61, %v3769_v59  ;;  %v4415_v59 = vld [vmem:[%s465_s9] ss:$0 sm:$0xff] }
 0xdf5   : > { %v3773_v62 = vpop.permute.xlu1 %3772 }
 0xdf6   : > { %v3777_v52 = vsel %vm2077_vm5, %v3776_v63, %v3773_v62 }
 0xdf7   : > { %4693 = vmatmul.mubr.msk.f32.vlgmr.msra.gmra.mrb[18].mxu0 %vm505_vm2, %v3777_v52 }
 0xdf8   : > { %4738 = vmatprep.mubr.msk.f32.mxu0 %vm5151_vm1, %v5152_v7  ;;  %4808 = vmatpush3.bf16.msra.mxu0 %v4807_v27 }
 0xdf9   : > { %4809 = vmatprep.subr.bf16.mxu0 %v5150_v4 }
 0xdfc   : > { %4811 = vmatpush3.bf16.msra.mxu0 %v4810_v30 }
 0xdfd   : > { %4812 = vmatprep.subr.bf16.mxu0 %v5150_v4 }
 0xe00   : > { %4814 = vmatpush3.bf16.msra.mxu0 %v4813_v33 }
 0xe01   : > { %4815 = vmatprep.subr.bf16.mxu0 %v5150_v4 }
 0xe04   : > { %4817 = vmatpush3.bf16.msra.mxu0 %v4816_v60 }
 0xe05   : > { %4818 = vmatprep.subr.bf16.mxu0 %v5150_v4 }
 0xe08   : > { %4820 = vmatpush3.bf16.msra.mxu0 %v4819_v39 }
 0xe09   : > { %4821 = vmatprep.subr.bf16.mxu0 %v5150_v4 }
 0xe0c   : > { %4823 = vmatpush3.bf16.msra.mxu0 %v4822_v42 }
 0xe0d   : > { %4824 = vmatprep.subr.bf16.mxu0 %v5150_v4 }
 0xe10   : > { %4826 = vmatpush3.bf16.msra.mxu0 %v4825_v46 }
 0xe11   : > { %4827 = vmatprep.subr.bf16.mxu0 %v5150_v4  ;;  %v3978_v4 = vld [vmem:[%s5405_s24 + $0x70] sm:$0xff] }
 0xe12   : > { %v4828_v58 = vpack.c.bf16 %v3979_v45, %v3978_v4 }
 0xe14   : > { %4829 = vmatpush3.bf16.msra.mxu0 %v4828_v58 }
 0xe15   : > { %4830 = vmatprep.subr.bf16.mxu0 (!%p4417_p4), %v5161_v29 }
 0xeca   : > { %v3851_v3 = vpop.f32.mrb[18].mxu0 }
 0xecb   : > { %v3852_v11 = vadd.f32 %v3851_v3, %v3781_v2  ;;  %v4694_v6 = vpop.f32.mrb[19].mxu0 }
 0xecd   : > { %v3855_v8 = vadd.f32 %v3852_v11, %v5616_v35  ;;  %v3881_v35 = vld [vmem:[%s5395_s20 + $0x10] sm:$0xff] }
 0xece   : > { %v4804_v21 = vpack.c.bf16 %v3882_v23, %v3881_v35  ;;  %v4083_v23 = vld [vmem:[%s5888_s7] sm:$0xff] (!%p4417_p4) }
 0xecf   : > { %v3856_v9 = vsel %vm505_vm2, %v3855_v8, 0.0  ;;  %v4831_v5 = vpack.c.bf16 (!%p4417_p4), %v4084_v18, %v4083_v23 }
 0xed0   : > { %3857 = vadd.xlane.f32.xlu1 %v3856_v9  ;;  %4805 = vmatpush3.bf16.msra.mxu1 %v4804_v21  ;;  %v4086_v21 = vld [vmem:[%s5888_s7 + $0x18] sm:$0xff] (!%p4417_p4) }
 0xed1   : > { %v4834_v25 = vpack.c.bf16 (!%p4417_p4), %v4086_v21, %v4085_v17 }
 0xf5d   : > { %v3858_v10 = vpop.xlane.xlu1 %3857 }
 0xf5e   : > { %v3859_v7 = vmul.f32 0.03125, %v3858_v10 }
 0xf60   : > { %v3860_v12 = vsub.f32 %v3855_v8, %v3859_v7 }
 0xf62   : > { %v3861_v13 = vmul.f32 %v3860_v12, %v3860_v12 }
 0xf64   : > { %v3862_v14 = vsel %vm505_vm2, %v3861_v13, 0.0 }
 0xf65   : > { %3863 = vadd.xlane.f32.xlu0 %v3862_v14 }
 0xff2   : > { %v3864_v47 = vpop.xlane.xlu0 %3863 }
 0xff3   : > { %v3865_v48 = vmul.f32 0.03125, %v3864_v47 }
 0xff5   : > { %v3866_v49 = vadd.f32 1e-05, %v3865_v48 }
 0xff7   : > { %4988 = vrsqrt.f32 %v3866_v49 }
0x1001   : > { %v4989_v51 = vpop.eup %4988 }
0x1002   : > { %v3868_v55 = vmul.f32 %v4989_v51, %v3860_v12 }
0x1004   : > { %v3873_v56 = vmul.f32 %v3872_v50, %v3868_v55 }
0x1006   : > { %v3878_v57 = vadd.f32 %v3877_v54, %v3873_v56 }
0x1008   : > { %4704 = vmatmul.mubr.msk.f32.vlgmr.msra.gmra.mrb[28].mxu1 %vm505_vm2, %v3878_v57 }
0x10db   : > { %v3959_v53 = vpop.f32.mrb[28].mxu1 }
0x10dc   : > { %v3960_v61 = vadd.f32 %v4415_v59, %v3959_v53  ;;  %v4705_v62 = vpop.f32.mrb[29].mxu1 }
0x10de   : > { %v3963_v63 = vmax.f32 %v3960_v61, 0.0 }
0x10e0   : > { %4739 = vmatmul.mubr.f32.vlgmr.msra.gmra.mrb[20].mxu0 %v3963_v63 }
0x10e1   : > { %4749 = vmatprep.mubr.msk.f32.mxu0 (!%p4417_p4), %vm5162_vm6, %v5163_v24  ;;  %4832 = vmatpush3.bf16.msra.mxu0 (!%p4417_p4), %v4831_v5 }
0x10e2   : > { %4833 = vmatprep.subr.bf16.mxu0 (!%p4417_p4), %v5161_v29 }
0x10e5   : > { %4835 = vmatpush3.bf16.msra.mxu0 (!%p4417_p4), %v4834_v25 }
0x11b3   : > { %v4050_v52 = vpop.f32.mrb[20].mxu0 }
0x11b4   : > { %v4051_v0 = vadd.f32 %v4050_v52, %v3983_v36  ;;  %v4740_v1 = vpop.f32.mrb[21].mxu0 }
0x11b6   : > { %v4054_v2 = vadd.f32 %v4051_v0, %v3878_v57 }
0x11b8   : > { %v4055_v3 = vsel %vm505_vm2, %v4054_v2, 0.0 }
0x11b9   : > { %4056 = vadd.xlane.f32.xlu1 %v4055_v3 }
0x1246   : > { %v4057_v11 = vpop.xlane.xlu1 %4056 }
0x1247   : > { %v4058_v6 = vmul.f32 0.03125, %v4057_v11 }
0x1249   : > { %v4059_v8 = vsub.f32 %v4054_v2, %v4058_v6 }
0x124b   : > { %v4060_v9 = vmul.f32 %v4059_v8, %v4059_v8 }
0x124d   : > { %v4061_v10 = vsel %vm505_vm2, %v4060_v9, 0.0 }
0x124e   : > { %4062 = vadd.xlane.f32.xlu0 %v4061_v10 }
0x12db   : > { %v4063_v7 = vpop.xlane.xlu0 %4062 }
0x12dc   : > { %v4064_v12 = vmul.f32 0.03125, %v4063_v7 }
0x12de   : > { %v4065_v13 = vadd.f32 1e-05, %v4064_v12 }
0x12e0   : > { %4990 = vrsqrt.f32 %v4065_v13 }
0x12ea   : > { %v4991_v14 = vpop.eup %4990 }
0x12eb   : > { %v4067_v16 = vmul.f32 %v4991_v14, %v4059_v8  ;;  %4082 = sbr.rel (%p4417_p4) target bundleno = 5064 (0x13c8), region = 68 }
0x12ed   : > { %v4072_v19 = vmul.f32 %v4071_v22, %v4067_v16 }
0x12ef   : > { %v4077_v35 = vadd.f32 %v4076_v15, %v4072_v19 }
0x12f1   : > { %4078 = vst.msk [vmem:[#allocation2] sm:$0xff] %vm505_vm2, %v4077_v35  ;;  %4750 = vmatmul.mubr.msk.f32.vlgmr.msra.gmra.mrb[0].mxu0 (!%p4417_p4), %vm505_vm2, %v4077_v35 }
0x13c4   : > { %v4163_v27 = vpop.f32.mrb[0].mxu0 }
0x13c5   : > { %v4164_v28 = vadd.f32 %v4418_v26, %v4163_v27  ;;  %v4751_v30 = vpop.f32.mrb[1].mxu0 }
0x13c7   : > { %4167 = vst [vmem:[%s444_s1] sm:$0xff] %v4164_v28 }
0x13c8 PF: > { %s4421_s28 = sshll.u32 %s5133_s16, 7  ;;  %s5929_s2 = sld [smem:[#allocation24_spill]] }
0x13c9   : > { %s4182_s13 = sshll.u32 %s444_s1, 4  ;;  %s5930_s14 = sand.u32 1, %s5109_s10   ;;  %s4183_s13 = int_to_ptr.vmem [resolvable:$true] %s4182_s13 }
0x13ca   : > { %s4169_s19 = scalar_lea.sflag [#allocation5], %s5930_s14  ;;  %s5023_s11 = scalar_lea.vmem %s4183_s13, 128 }
0x13cb   : > { %p5024_p0 = scmp.ne.s32.totalorder %s4183_s13, %s5023_s11  ;;  %p5931_p1 = scmp.ne.s32.totalorder %s5922_s12, 0 }
0x13cc   : > { %s5164_s27 = smov [#allocation6]  }
0x13cd   : > { %p5025_p5 = pnand %p5024_p0, %p5931_p1  ;;  %s5027_s23 = sshll.u32 %s5164_s27, 4  ;;  %s5028_s23 = int_to_ptr.vmem [resolvable:$false] %s5027_s23 }
0x13ce   : > { %s5821_s30 = scalar_lea.hbm %s5929_s2, %s4421_s28  ;;  %s5029_s17 = scalar_lea.vmem %s5028_s23, 256 }
0x13cf   : > { %p5026_p7 = pneg %p5025_p5  ;;  %p5030_p3 = scmp.lt.s32.totalorder %s4183_s13, %s5028_s23 }
0x13d0   : > { %p5031_p10 = scmp.lt.s32.totalorder %s5029_s17, %s5023_s11 }
0x13d2   : > { %p5032_p11 = por %p5031_p10, %p5030_p3 }
0x13d4   : > { %p5033_p6 = pnand %p5032_p11, %p5026_p7 }
0x13d6   : > { %5036 = shalt.err (!%p5033_p6)
}
0x13d7   : > { %s5037_s1 = scalar_lea.hbm %s5821_s30, 128  ;;  %s5041_s21 = scalar_lea.hbm %s5929_s2, 256 }
0x13d8   : > { %p5038_p9 = scmp.ne.s32.totalorder %s5821_s30, %s5037_s1  ;;  %p5042_p2 = scmp.lt.u32.totalorder %s5821_s30, %s5929_s2 }
0x13d9   : > { %p5043_p8 = scmp.lt.u32.totalorder %s5041_s21, %s5037_s1  ;;  %p5045_p0 = scmp.lt.u32.totalorder %s5037_s1, %s5821_s30 }
0x13da   : > { %p5039_p13 = pnand %p5038_p9, %p5931_p1 }
0x13db   : > { %p5044_p4 = por %p5043_p8, %p5042_p2 }
0x13dc   : > { %p5040_p12 = pneg %p5039_p13 }
0x13dd   : > { %p5046_p5 = por %p5045_p0, %p5044_p4 }
0x13df   : > { %p5047_p7 = pnand %p5046_p5, %p5040_p12 }
0x13e1   : > { %5050 = shalt.err (!%p5047_p7)
}
0x13e2   : > { %4838 = dma.vmem_to_hbm [thread:$0]  (%p5931_p1), %s4183_s13, 128, %s5821_s30, %s4169_s19  }
0x13e3 PF: > { %s5932_s20 = sld [smem:[#allocation15_spill]]  ;;  %s5933_s29 = sld [smem:[#allocation9_spill]] }
0x13e4   : > { %s5934_s9 = sld [smem:[#allocation20_spill]] }
0x13e9   : > { %p4849_p3 = scmp.ge.s32.totalorder %s5932_s20, 2  ;;  %s4194_s15 = sand.u32 1, %s5933_s29  }
0x13ea   : > { %p5935_p10 = scmp.ne.s32.totalorder %s5934_s9, 0  ;;  %s4195_s22 = scalar_lea.sflag [#allocation5], %s4194_s15 }
0x13ec   : > { %p4845_p11 = pnand %p4849_p3, %p5935_p10 }
0x13ee   : > { %5100 = dma.done.wait (!%p4845_p11), %s4195_s22, 128  }
0x13ef   : > { %5102 = vsyncadd (!%p4845_p11), %s4195_s22, 4294967168  ;;  %s25_s19 = sadd.s32 1, %s5932_s20   ;;  %s5936_s28 = sld [smem:[#allocation10_spill]] }
0x13f0   : > { %p22_p6 = scmp.ge.s32.totalorder %s25_s19, 6   ;;  %s5937_s11 = sld [smem:[#allocation19_spill]] }
0x13f1   : > { %s5938_s12 = sld [smem:[#allocation11_spill]]  ;;  %s5939_s13 = sld [smem:[#allocation12_spill]] }
0x13f2   : > { %s5940_s14 = sld [smem:[#allocation18_spill]]  ;;  %s5941_s15 = sld [smem:[#allocation13_spill]] }
0x13f3   : > { %s5942_s16 = sld [smem:[#allocation14_spill]]  ;;  %s5943_s17 = sld [smem:[#allocation16_spill]] }
0x13f4   : > { %s5944_s18 = sld [smem:[#allocation17_spill]]  ;;  %s5945_s30 = smov %s5109_s10 }
0x13f5   : > { %s5946_s10 = smov %s5936_s28  ;;  %24 = sbr.rel (!%p22_p6) target bundleno = 14 (0xe), region = 134 }
0x13fc   :  { %4200 = vsyncpa [#allocation4], 1 }
0x13fd   :  { %4202 = vsyncpa [#allocation4 + $0x1], 1 }
0x13fe   :  { %4203 = vsyncpa [#allocation5], 1 }
0x13ff   :  { %4205 = vsyncpa [#allocation5 + $0x1], 1 }

</bundles_post_ra>
